<compile_context>
chip_gen: v7x
topology: tpu7x:2x2x1
jax: 0.10.0
libtpu: 0.0.40
codegen_flags: <defaults>
</compile_context>

<pallas_src>
import functools

import jax
import jax.numpy as jnp
from jax.experimental import pallas as pl
from jax.experimental.pallas import tpu as pltpu


# ----------------------------------------------------------------------------
# Kernel
# ----------------------------------------------------------------------------
def make_base_field_kernel(nb_layers, hid_dims, xyz_dims, skips, dot_dtype):
    H, Dx = hid_dims, xyz_dims
    dd = dot_dtype or jnp.float32

    def kernel(xyz_ref, dir_ref, wt_ref, bt_ref, wh_ref, bh_ref,
               wc1_ref, bc1_ref, wc2_ref, bc2_ref, out_ref):
        # Transposed layout: rows = feature channels (sublanes), cols = points (lanes).
        x = xyz_ref[...]                 # (Dx, TM)  dot_dtype
        d = dir_ref[...]                 # (Dd, TM)  dot_dtype

        h = None
        for i in range(nb_layers):
            w = wt_ref[i]                # (H, H+Dx) packed/padded layer weight
            if i == 0:
                # fc0: input is the xyz embedding only (stored in cols [0:Dx]).
                z = jnp.dot(w[:, :Dx], x, preferred_element_type=jnp.float32)
            elif i in skips:
                # torch: x = cat([x, xyz_embeds], dim=1); x = fc_i(x)
                # -> single K = H+Dx dot on a [h; x] slab.
                slab = jnp.concatenate([h.astype(dd), x], axis=0)   # (H+Dx, TM)
                z = jnp.dot(w, slab, preferred_element_type=jnp.float32)
            else:
                z = jnp.dot(w[:, :H], h.astype(dd),
                            preferred_element_type=jnp.float32)
            # bias (H, 1) broadcasts across lanes; ReLU activation; keep f32.
            h = jnp.maximum(z + bt_ref[i], 0.0)                     # (H, TM) f32

        # Fused head:  rows [0:H]  = feat_out(h)   (no activation in torch)
        #              row  [H]    = alpha_out(h)
        hb = h.astype(dd)
        head = jnp.dot(wh_ref[...], hb,
                       preferred_element_type=jnp.float32) + bh_ref[...]  # (H+1, TM)
        feats = head[:H, :]              # (H, TM) f32
        alphas = head[H:H + 1, :]        # (1, TM) f32

        # use_dirs=True branch: colors = sigmoid(color_out(relu(color_fc(cat([feats, dirs])))))
        cin = jnp.concatenate([feats.astype(dd), d], axis=0)        # (H+Dd, TM)
        c = jnp.dot(wc1_ref[...], cin,
                    preferred_element_type=jnp.float32) + bc1_ref[...]
        c = jnp.maximum(c, 0.0)
        colors = jnp.dot(wc2_ref[...], c.astype(dd),
                         preferred_element_type=jnp.float32) + bc2_ref[...]
        colors = jax.nn.sigmoid(colors)                              # (3, TM)

        # Single lane-dense (4, TM) store: row 0 = alpha, rows 1..3 = rgb.
        out_ref[...] = jnp.concatenate([alphas, colors],
                                       axis=0).astype(out_ref.dtype)

    return kernel


# ----------------------------------------------------------------------------
# Host-side weight packing (torch (out, in) layout -> packed kernel operands)
# ----------------------------------------------------------------------------
def pack_params(params, *, nb_layers, hid_dims, xyz_dims, dot_dtype):
    H, Dx = hid_dims, xyz_dims
    dd = dot_dtype or jnp.float32

    # Trunk: every layer weight zero-padded into a (H, H+Dx) slot.
    #   layer 0      -> cols [0:Dx]
    #   non-skip i>0 -> cols [0:H]
    #   skip layer   -> cols [0:H+Dx]  (torch concat order is [h, xyz])
    w_trunk = jnp.zeros((nb_layers, H, H + Dx), jnp.float32)
    b_trunk = jnp.zeros((nb_layers, H, 1), jnp.float32)
    for i, (w, b) in enumerate(params["fcs"]):
        w_trunk = w_trunk.at[i, :, : w.shape[1]].set(w)
        b_trunk = b_trunk.at[i, :, 0].set(b)

    wa, ba = params["alpha"]         # (1, H), (1,)
    wf, bf = params["feat"]          # (H, H), (H,)
    w_head = jnp.concatenate([wf, wa], axis=0)             # (H+1, H)
    b_head = jnp.concatenate([bf, ba], axis=0)[:, None]    # (H+1, 1)

    wc1, bc1 = params["color_fc"]    # (H//2, H+Dd), (H//2,)
    wc2, bc2 = params["color_out"]   # (3, H//2), (3,)

    return (w_trunk.astype(dd), b_trunk,
            w_head.astype(dd), b_head,
            wc1.astype(dd), bc1[:, None],
            wc2.astype(dd), bc2[:, None])


# ----------------------------------------------------------------------------
# Wrapper
# ----------------------------------------------------------------------------
def base_field_forward(xyz_embeds, dir_embeds, params, *, nb_layers, hid_dims,
                       skips, tm=512, dot_dtype=jnp.bfloat16):
    N, Dx = xyz_embeds.shape
    Dd = dir_embeds.shape[1]
    # TODO(synk): ragged N (N % tm != 0) would need pl.cdiv grid + row masking.
    assert N % tm == 0, "N must be a multiple of the row tile"

    dd = dot_dtype or jnp.float32
    packed = pack_params(params, nb_layers=nb_layers, hid_dims=hid_dims,
                         xyz_dims=Dx, dot_dtype=dot_dtype)

    # Batch-on-lanes: present the point dimension on the lane axis.
    xT = xyz_embeds.T.astype(dd)     # (Dx, N)
    dT = dir_embeds.T.astype(dd)     # (Dd, N)

    kernel = make_base_field_kernel(nb_layers, hid_dims, Dx, skips, dot_dtype)

    def replicated_spec(a):
        zeros = (0,) * a.ndim
        return pl.BlockSpec(a.shape, lambda i, z=zeros: z)

    in_specs = ([pl.BlockSpec((Dx, tm), lambda i: (0, i)),
                 pl.BlockSpec((Dd, tm), lambda i: (0, i))]
                + [replicated_spec(a) for a in packed])
    out_specs = pl.BlockSpec((4, tm), lambda i: (0, i))
    out_shape = jax.ShapeDtypeStruct((4, N), jnp.float32)

    # Working set is tiny (< 1 MiB of weights + a few hundred KiB of
    # activations at tm=512), so the default scoped VMEM limit is fine on
    # v5e/v6e/v7x; raise vmem_limit_bytes only if tm is pushed very large.
    out = pl.pallas_call(
        kernel,
        out_shape=out_shape,
        grid_spec=pltpu.PrefetchScalarGridSpec(
            num_scalar_prefetch=0,
            grid=(N // tm,),
            in_specs=in_specs,
            out_specs=out_specs),
        compiler_params=pltpu.CompilerParams(
            dimension_semantics=("parallel",)),
    )(xT, dT, *packed)

    alphas = out[0:1, :].T           # (N, 1)
    colors = out[1:4, :].T           # (N, 3)
    return alphas, colors


# ----------------------------------------------------------------------------
# Deterministic parameter construction (synthetic; torch nn.Linear layout)
# ----------------------------------------------------------------------------
def init_params(key, nb_layers, hid_dims, xyz_dims, dir_dims, skips):
    def linear(k, fan_in, fan_out):
        kw, kb = jax.random.split(k)
        s = 1.0 / (fan_in ** 0.5)
        w = jax.random.uniform(kw, (fan_out, fan_in), jnp.float32, -s, s)
        b = jax.random.uniform(kb, (fan_out,), jnp.float32, -s, s)
        return w, b

    keys = jax.random.split(key, nb_layers + 4)
    fcs = []
    for i in range(nb_layers):
        if i == 0:
            fan_in = xyz_dims
        elif i in skips:
            fan_in = hid_dims + xyz_dims
        else:
            fan_in = hid_dims
        fcs.append(linear(keys[i], fan_in, hid_dims))

    return {
        "fcs": fcs,
        "alpha": linear(keys[nb_layers + 0], hid_dims, 1),
        "feat": linear(keys[nb_layers + 1], hid_dims, hid_dims),
        "color_fc": linear(keys[nb_layers + 2], hid_dims + dir_dims,
                           hid_dims // 2),
        "color_out": linear(keys[nb_layers + 3], hid_dims // 2, 3),
    }


# ----------------------------------------------------------------------------
# Pure-JAX reference (mirrors the PyTorch forward; optional bf16 dot operands)
# ----------------------------------------------------------------------------
def base_field_ref(xyz, dirs, params, *, nb_layers, skips, dot_dtype=None):
    def mm(a, w):  # a: (N, in), w: torch (out, in)
        if dot_dtype is not None:
            a = a.astype(dot_dtype)
            w = w.astype(dot_dtype)
        return jnp.dot(a, w.T, preferred_element_type=jnp.float32)

    x = xyz
    for i, (w, b) in enumerate(params["fcs"]):
        if i in skips:
            x = jnp.concatenate([x, xyz], axis=1)
        x = jnp.maximum(mm(x, w) + b, 0.0)

    wa, ba = params["alpha"]
    wf, bf = params["feat"]
    alphas = mm(x, wa) + ba
    feats = mm(x, wf) + bf
    wc1, bc1 = params["color_fc"]
    wc2, bc2 = params["color_out"]
    c = jnp.maximum(mm(jnp.concatenate([feats, dirs], axis=1), wc1) + bc1, 0.0)
    colors = jax.nn.sigmoid(mm(c, wc2) + bc2)
    return alphas, colors


# ----------------------------------------------------------------------------
# Main
# ----------------------------------------------------------------------------
if __name__ == "__main__":
    # Small, module-consistent feature dims; enough rows for >= 4 grid steps
    # (keeps both v7x TensorCores busy and amortizes per-step overhead).
    NB_LAYERS = 8
    HID = 32
    XYZ_DIMS = 16
    DIR_DIMS = 8
    SKIPS = [NB_LAYERS // 2]
    N = 2048
    TM = 512

    key = jax.random.PRNGKey(0)
    k_xyz, k_dir, k_par = jax.random.split(key, 3)
    xyz_embeds = jax.random.normal(k_xyz, (N, XYZ_DIMS), jnp.float32)
    dir_embeds = jax.random.normal(k_dir, (N, DIR_DIMS), jnp.float32)
    params = init_params(k_par, NB_LAYERS, HID, XYZ_DIMS, DIR_DIMS, SKIPS)

    fwd = functools.partial(base_field_forward, nb_layers=NB_LAYERS,
                            hid_dims=HID, skips=SKIPS, tm=TM,
                            dot_dtype=jnp.bfloat16)
    alphas, colors = jax.block_until_ready(fwd(xyz_embeds, dir_embeds, params))
    assert alphas.shape == (N, 1) and colors.shape == (N, 3)

    # (1) Structural check against a bf16-matched reference (same rounding
    #     points as the kernel) -- should agree tightly.
    ref_a_bf, ref_c_bf = base_field_ref(xyz_embeds, dir_embeds, params,
                                        nb_layers=NB_LAYERS, skips=SKIPS,
                                        dot_dtype=jnp.bfloat16)
    assert jnp.allclose(alphas, ref_a_bf, atol=1e-2, rtol=1e-2)
    assert jnp.allclose(colors, ref_c_bf, atol=1e-2, rtol=1e-2)

    # (2) Fidelity to the f32 torch forward (bf16 MXU operands => loose tol,
    #     as flagged in the performance review).
    ref_a, ref_c = base_field_ref(xyz_embeds, dir_embeds, params,
                                  nb_layers=NB_LAYERS, skips=SKIPS,
                                  dot_dtype=None)
    assert jnp.allclose(alphas, ref_a, atol=1e-1, rtol=1e-1)
    assert jnp.allclose(colors, ref_c, atol=5e-2, rtol=5e-2)

    print("KERNEL_OK")
</pallas_src>

<mosaic_0001>
module attributes {stable_mosaic.version = 11 : i64} {
  func.func @kernel(%arg0: i32, %arg1: memref<16x512xbf16, #tpu.memory_space<vmem>>, %arg2: memref<8x512xbf16, #tpu.memory_space<vmem>>, %arg3: memref<8x32x48xbf16, #tpu.memory_space<vmem>>, %arg4: memref<8x32x1xf32, #tpu.memory_space<vmem>>, %arg5: memref<33x32xbf16, #tpu.memory_space<vmem>>, %arg6: memref<33x1xf32, #tpu.memory_space<vmem>>, %arg7: memref<16x40xbf16, #tpu.memory_space<vmem>>, %arg8: memref<16x1xf32, #tpu.memory_space<vmem>>, %arg9: memref<3x16xbf16, #tpu.memory_space<vmem>>, %arg10: memref<3x1xf32, #tpu.memory_space<vmem>>, %arg11: memref<4x512xf32, #tpu.memory_space<vmem>>) attributes {dimension_semantics = [#tpu.dimension_semantics<parallel>], iteration_bounds = array<i64: 4>, scalar_prefetch = 0 : i64, scratch_operands = 0 : i64, tpu.core_type = #tpu.core_type<tc>, window_params = [{transform_indices = @transform_0, window_bounds = array<i64: 16, 512>}, {transform_indices = @transform_1, window_bounds = array<i64: 8, 512>}, {pipeline_mode = #tpu.pipeline_mode<synchronous>, transform_indices = @transform_2, window_bounds = array<i64: 8, 32, 48>}, {pipeline_mode = #tpu.pipeline_mode<synchronous>, transform_indices = @transform_3, window_bounds = array<i64: 8, 32, 1>}, {pipeline_mode = #tpu.pipeline_mode<synchronous>, transform_indices = @transform_4, window_bounds = array<i64: 33, 32>}, {pipeline_mode = #tpu.pipeline_mode<synchronous>, transform_indices = @transform_5, window_bounds = array<i64: 33, 1>}, {pipeline_mode = #tpu.pipeline_mode<synchronous>, transform_indices = @transform_6, window_bounds = array<i64: 16, 40>}, {pipeline_mode = #tpu.pipeline_mode<synchronous>, transform_indices = @transform_7, window_bounds = array<i64: 16, 1>}, {pipeline_mode = #tpu.pipeline_mode<synchronous>, transform_indices = @transform_8, window_bounds = array<i64: 3, 16>}, {pipeline_mode = #tpu.pipeline_mode<synchronous>, transform_indices = @transform_9, window_bounds = array<i64: 3, 1>}, {transform_indices = @transform_10, window_bounds = array<i64: 4, 512>}]} {
    %c0 = arith.constant 0 : index
    %c0_0 = arith.constant 0 : index
    %0 = vector.load %arg1[%c0, %c0_0] : memref<16x512xbf16, #tpu.memory_space<vmem>>, vector<16x512xbf16>
    %c0_1 = arith.constant 0 : index
    %c0_2 = arith.constant 0 : index
    %1 = vector.load %arg2[%c0_1, %c0_2] : memref<8x512xbf16, #tpu.memory_space<vmem>>, vector<8x512xbf16>
    %c0_3 = arith.constant 0 : index
    %c0_4 = arith.constant 0 : index
    %c0_5 = arith.constant 0 : index
    %2 = vector.load %arg3[%c0_3, %c0_4, %c0_5] : memref<8x32x48xbf16, #tpu.memory_space<vmem>>, vector<1x32x48xbf16>
    %3 = vector.shape_cast %2 : vector<1x32x48xbf16> to vector<32x48xbf16>
    %4 = vector.extract_strided_slice %3 {offsets = [0, 0], sizes = [32, 16], strides = [1, 1]} : vector<32x48xbf16> to vector<32x16xbf16>
    %cst = arith.constant dense<0.000000e+00> : vector<32x512xf32>
    %5 = tpu.matmul %4, %0, %cst {dimension_numbers = #tpu.dot_dimension_numbers<[1], [0], [0], [1], [0, 0, 1, 1], [], []>} : vector<32x16xbf16>, vector<16x512xbf16>, vector<32x512xf32> -> vector<32x512xf32>
    %c0_6 = arith.constant 0 : index
    %c0_7 = arith.constant 0 : index
    %c0_8 = arith.constant 0 : index
    %6 = vector.load %arg4[%c0_6, %c0_7, %c0_8] : memref<8x32x1xf32, #tpu.memory_space<vmem>>, vector<1x32x1xf32>
    %7 = vector.shape_cast %6 : vector<1x32x1xf32> to vector<32x1xf32>
    %8 = vector.broadcast %7 : vector<32x1xf32> to vector<32x512xf32>
    %9 = arith.addf %5, %8 : vector<32x512xf32>
    %cst_9 = arith.constant 0.000000e+00 : f32
    %10 = vector.broadcast %cst_9 : f32 to vector<32x512xf32>
    %11 = arith.maximumf %9, %10 : vector<32x512xf32>
    %c1 = arith.constant 1 : index
    %c0_10 = arith.constant 0 : index
    %c0_11 = arith.constant 0 : index
    %12 = vector.load %arg3[%c1, %c0_10, %c0_11] : memref<8x32x48xbf16, #tpu.memory_space<vmem>>, vector<1x32x48xbf16>
    %13 = vector.shape_cast %12 : vector<1x32x48xbf16> to vector<32x48xbf16>
    %14 = vector.extract_strided_slice %13 {offsets = [0, 0], sizes = [32, 32], strides = [1, 1]} : vector<32x48xbf16> to vector<32x32xbf16>
    %15 = arith.truncf %11 : vector<32x512xf32> to vector<32x512xbf16>
    %cst_12 = arith.constant dense<0.000000e+00> : vector<32x512xf32>
    %16 = tpu.matmul %14, %15, %cst_12 {dimension_numbers = #tpu.dot_dimension_numbers<[1], [0], [0], [1], [0, 0, 1, 1], [], []>} : vector<32x32xbf16>, vector<32x512xbf16>, vector<32x512xf32> -> vector<32x512xf32>
    %c1_13 = arith.constant 1 : index
    %c0_14 = arith.constant 0 : index
    %c0_15 = arith.constant 0 : index
    %17 = vector.load %arg4[%c1_13, %c0_14, %c0_15] : memref<8x32x1xf32, #tpu.memory_space<vmem>>, vector<1x32x1xf32>
    %18 = vector.shape_cast %17 : vector<1x32x1xf32> to vector<32x1xf32>
    %19 = vector.broadcast %18 : vector<32x1xf32> to vector<32x512xf32>
    %20 = arith.addf %16, %19 : vector<32x512xf32>
    %cst_16 = arith.constant 0.000000e+00 : f32
    %21 = vector.broadcast %cst_16 : f32 to vector<32x512xf32>
    %22 = arith.maximumf %20, %21 : vector<32x512xf32>
    %c2 = arith.constant 2 : index
    %c0_17 = arith.constant 0 : index
    %c0_18 = arith.constant 0 : index
    %23 = vector.load %arg3[%c2, %c0_17, %c0_18] : memref<8x32x48xbf16, #tpu.memory_space<vmem>>, vector<1x32x48xbf16>
    %24 = vector.shape_cast %23 : vector<1x32x48xbf16> to vector<32x48xbf16>
    %25 = vector.extract_strided_slice %24 {offsets = [0, 0], sizes = [32, 32], strides = [1, 1]} : vector<32x48xbf16> to vector<32x32xbf16>
    %26 = arith.truncf %22 : vector<32x512xf32> to vector<32x512xbf16>
    %cst_19 = arith.constant dense<0.000000e+00> : vector<32x512xf32>
    %27 = tpu.matmul %25, %26, %cst_19 {dimension_numbers = #tpu.dot_dimension_numbers<[1], [0], [0], [1], [0, 0, 1, 1], [], []>} : vector<32x32xbf16>, vector<32x512xbf16>, vector<32x512xf32> -> vector<32x512xf32>
    %c2_20 = arith.constant 2 : index
    %c0_21 = arith.constant 0 : index
    %c0_22 = arith.constant 0 : index
    %28 = vector.load %arg4[%c2_20, %c0_21, %c0_22] : memref<8x32x1xf32, #tpu.memory_space<vmem>>, vector<1x32x1xf32>
    %29 = vector.shape_cast %28 : vector<1x32x1xf32> to vector<32x1xf32>
    %30 = vector.broadcast %29 : vector<32x1xf32> to vector<32x512xf32>
    %31 = arith.addf %27, %30 : vector<32x512xf32>
    %cst_23 = arith.constant 0.000000e+00 : f32
    %32 = vector.broadcast %cst_23 : f32 to vector<32x512xf32>
    %33 = arith.maximumf %31, %32 : vector<32x512xf32>
    %c3 = arith.constant 3 : index
    %c0_24 = arith.constant 0 : index
    %c0_25 = arith.constant 0 : index
    %34 = vector.load %arg3[%c3, %c0_24, %c0_25] : memref<8x32x48xbf16, #tpu.memory_space<vmem>>, vector<1x32x48xbf16>
    %35 = vector.shape_cast %34 : vector<1x32x48xbf16> to vector<32x48xbf16>
    %36 = vector.extract_strided_slice %35 {offsets = [0, 0], sizes = [32, 32], strides = [1, 1]} : vector<32x48xbf16> to vector<32x32xbf16>
    %37 = arith.truncf %33 : vector<32x512xf32> to vector<32x512xbf16>
    %cst_26 = arith.constant dense<0.000000e+00> : vector<32x512xf32>
    %38 = tpu.matmul %36, %37, %cst_26 {dimension_numbers = #tpu.dot_dimension_numbers<[1], [0], [0], [1], [0, 0, 1, 1], [], []>} : vector<32x32xbf16>, vector<32x512xbf16>, vector<32x512xf32> -> vector<32x512xf32>
    %c3_27 = arith.constant 3 : index
    %c0_28 = arith.constant 0 : index
    %c0_29 = arith.constant 0 : index
    %39 = vector.load %arg4[%c3_27, %c0_28, %c0_29] : memref<8x32x1xf32, #tpu.memory_space<vmem>>, vector<1x32x1xf32>
    %40 = vector.shape_cast %39 : vector<1x32x1xf32> to vector<32x1xf32>
    %41 = vector.broadcast %40 : vector<32x1xf32> to vector<32x512xf32>
    %42 = arith.addf %38, %41 : vector<32x512xf32>
    %cst_30 = arith.constant 0.000000e+00 : f32
    %43 = vector.broadcast %cst_30 : f32 to vector<32x512xf32>
    %44 = arith.maximumf %42, %43 : vector<32x512xf32>
    %c4 = arith.constant 4 : index
    %c0_31 = arith.constant 0 : index
    %c0_32 = arith.constant 0 : index
    %45 = vector.load %arg3[%c4, %c0_31, %c0_32] : memref<8x32x48xbf16, #tpu.memory_space<vmem>>, vector<1x32x48xbf16>
    %46 = vector.shape_cast %45 : vector<1x32x48xbf16> to vector<32x48xbf16>
    %47 = arith.truncf %44 : vector<32x512xf32> to vector<32x512xbf16>
    %48 = tpu.concatenate %47, %0 in 0 : vector<32x512xbf16>, vector<16x512xbf16> -> vector<48x512xbf16>
    %cst_33 = arith.constant dense<0.000000e+00> : vector<32x512xf32>
    %49 = tpu.matmul %46, %48, %cst_33 {dimension_numbers = #tpu.dot_dimension_numbers<[1], [0], [0], [1], [0, 0, 1, 1], [], []>} : vector<32x48xbf16>, vector<48x512xbf16>, vector<32x512xf32> -> vector<32x512xf32>
    %c4_34 = arith.constant 4 : index
    %c0_35 = arith.constant 0 : index
    %c0_36 = arith.constant 0 : index
    %50 = vector.load %arg4[%c4_34, %c0_35, %c0_36] : memref<8x32x1xf32, #tpu.memory_space<vmem>>, vector<1x32x1xf32>
    %51 = vector.shape_cast %50 : vector<1x32x1xf32> to vector<32x1xf32>
    %52 = vector.broadcast %51 : vector<32x1xf32> to vector<32x512xf32>
    %53 = arith.addf %49, %52 : vector<32x512xf32>
    %cst_37 = arith.constant 0.000000e+00 : f32
    %54 = vector.broadcast %cst_37 : f32 to vector<32x512xf32>
    %55 = arith.maximumf %53, %54 : vector<32x512xf32>
    %c5 = arith.constant 5 : index
    %c0_38 = arith.constant 0 : index
    %c0_39 = arith.constant 0 : index
    %56 = vector.load %arg3[%c5, %c0_38, %c0_39] : memref<8x32x48xbf16, #tpu.memory_space<vmem>>, vector<1x32x48xbf16>
    %57 = vector.shape_cast %56 : vector<1x32x48xbf16> to vector<32x48xbf16>
    %58 = vector.extract_strided_slice %57 {offsets = [0, 0], sizes = [32, 32], strides = [1, 1]} : vector<32x48xbf16> to vector<32x32xbf16>
    %59 = arith.truncf %55 : vector<32x512xf32> to vector<32x512xbf16>
    %cst_40 = arith.constant dense<0.000000e+00> : vector<32x512xf32>
    %60 = tpu.matmul %58, %59, %cst_40 {dimension_numbers = #tpu.dot_dimension_numbers<[1], [0], [0], [1], [0, 0, 1, 1], [], []>} : vector<32x32xbf16>, vector<32x512xbf16>, vector<32x512xf32> -> vector<32x512xf32>
    %c5_41 = arith.constant 5 : index
    %c0_42 = arith.constant 0 : index
    %c0_43 = arith.constant 0 : index
    %61 = vector.load %arg4[%c5_41, %c0_42, %c0_43] : memref<8x32x1xf32, #tpu.memory_space<vmem>>, vector<1x32x1xf32>
    %62 = vector.shape_cast %61 : vector<1x32x1xf32> to vector<32x1xf32>
    %63 = vector.broadcast %62 : vector<32x1xf32> to vector<32x512xf32>
    %64 = arith.addf %60, %63 : vector<32x512xf32>
    %cst_44 = arith.constant 0.000000e+00 : f32
    %65 = vector.broadcast %cst_44 : f32 to vector<32x512xf32>
    %66 = arith.maximumf %64, %65 : vector<32x512xf32>
    %c6 = arith.constant 6 : index
    %c0_45 = arith.constant 0 : index
    %c0_46 = arith.constant 0 : index
    %67 = vector.load %arg3[%c6, %c0_45, %c0_46] : memref<8x32x48xbf16, #tpu.memory_space<vmem>>, vector<1x32x48xbf16>
    %68 = vector.shape_cast %67 : vector<1x32x48xbf16> to vector<32x48xbf16>
    %69 = vector.extract_strided_slice %68 {offsets = [0, 0], sizes = [32, 32], strides = [1, 1]} : vector<32x48xbf16> to vector<32x32xbf16>
    %70 = arith.truncf %66 : vector<32x512xf32> to vector<32x512xbf16>
    %cst_47 = arith.constant dense<0.000000e+00> : vector<32x512xf32>
    %71 = tpu.matmul %69, %70, %cst_47 {dimension_numbers = #tpu.dot_dimension_numbers<[1], [0], [0], [1], [0, 0, 1, 1], [], []>} : vector<32x32xbf16>, vector<32x512xbf16>, vector<32x512xf32> -> vector<32x512xf32>
    %c6_48 = arith.constant 6 : index
    %c0_49 = arith.constant 0 : index
    %c0_50 = arith.constant 0 : index
    %72 = vector.load %arg4[%c6_48, %c0_49, %c0_50] : memref<8x32x1xf32, #tpu.memory_space<vmem>>, vector<1x32x1xf32>
    %73 = vector.shape_cast %72 : vector<1x32x1xf32> to vector<32x1xf32>
    %74 = vector.broadcast %73 : vector<32x1xf32> to vector<32x512xf32>
    %75 = arith.addf %71, %74 : vector<32x512xf32>
    %cst_51 = arith.constant 0.000000e+00 : f32
    %76 = vector.broadcast %cst_51 : f32 to vector<32x512xf32>
    %77 = arith.maximumf %75, %76 : vector<32x512xf32>
    %c7 = arith.constant 7 : index
    %c0_52 = arith.constant 0 : index
    %c0_53 = arith.constant 0 : index
    %78 = vector.load %arg3[%c7, %c0_52, %c0_53] : memref<8x32x48xbf16, #tpu.memory_space<vmem>>, vector<1x32x48xbf16>
    %79 = vector.shape_cast %78 : vector<1x32x48xbf16> to vector<32x48xbf16>
    %80 = vector.extract_strided_slice %79 {offsets = [0, 0], sizes = [32, 32], strides = [1, 1]} : vector<32x48xbf16> to vector<32x32xbf16>
    %81 = arith.truncf %77 : vector<32x512xf32> to vector<32x512xbf16>
    %cst_54 = arith.constant dense<0.000000e+00> : vector<32x512xf32>
    %82 = tpu.matmul %80, %81, %cst_54 {dimension_numbers = #tpu.dot_dimension_numbers<[1], [0], [0], [1], [0, 0, 1, 1], [], []>} : vector<32x32xbf16>, vector<32x512xbf16>, vector<32x512xf32> -> vector<32x512xf32>
    %c7_55 = arith.constant 7 : index
    %c0_56 = arith.constant 0 : index
    %c0_57 = arith.constant 0 : index
    %83 = vector.load %arg4[%c7_55, %c0_56, %c0_57] : memref<8x32x1xf32, #tpu.memory_space<vmem>>, vector<1x32x1xf32>
    %84 = vector.shape_cast %83 : vector<1x32x1xf32> to vector<32x1xf32>
    %85 = vector.broadcast %84 : vector<32x1xf32> to vector<32x512xf32>
    %86 = arith.addf %82, %85 : vector<32x512xf32>
    %cst_58 = arith.constant 0.000000e+00 : f32
    %87 = vector.broadcast %cst_58 : f32 to vector<32x512xf32>
    %88 = arith.maximumf %86, %87 : vector<32x512xf32>
    %89 = arith.truncf %88 : vector<32x512xf32> to vector<32x512xbf16>
    %c0_59 = arith.constant 0 : index
    %c0_60 = arith.constant 0 : index
    %90 = vector.load %arg5[%c0_59, %c0_60] : memref<33x32xbf16, #tpu.memory_space<vmem>>, vector<33x32xbf16>
    %cst_61 = arith.constant dense<0.000000e+00> : vector<33x512xf32>
    %91 = tpu.matmul %90, %89, %cst_61 {dimension_numbers = #tpu.dot_dimension_numbers<[1], [0], [0], [1], [0, 0, 1, 1], [], []>} : vector<33x32xbf16>, vector<32x512xbf16>, vector<33x512xf32> -> vector<33x512xf32>
    %c0_62 = arith.constant 0 : index
    %c0_63 = arith.constant 0 : index
    %92 = vector.load %arg6[%c0_62, %c0_63] : memref<33x1xf32, #tpu.memory_space<vmem>>, vector<33x1xf32>
    %93 = vector.broadcast %92 : vector<33x1xf32> to vector<33x512xf32>
    %94 = arith.addf %91, %93 : vector<33x512xf32>
    %95 = vector.extract_strided_slice %94 {offsets = [0, 0], sizes = [32, 512], strides = [1, 1]} : vector<33x512xf32> to vector<32x512xf32>
    %96 = vector.extract_strided_slice %94 {offsets = [32, 0], sizes = [1, 512], strides = [1, 1]} : vector<33x512xf32> to vector<1x512xf32>
    %97 = arith.truncf %95 : vector<32x512xf32> to vector<32x512xbf16>
    %98 = tpu.concatenate %97, %1 in 0 : vector<32x512xbf16>, vector<8x512xbf16> -> vector<40x512xbf16>
    %c0_64 = arith.constant 0 : index
    %c0_65 = arith.constant 0 : index
    %99 = vector.load %arg7[%c0_64, %c0_65] : memref<16x40xbf16, #tpu.memory_space<vmem>>, vector<16x40xbf16>
    %cst_66 = arith.constant dense<0.000000e+00> : vector<16x512xf32>
    %100 = tpu.matmul %99, %98, %cst_66 {dimension_numbers = #tpu.dot_dimension_numbers<[1], [0], [0], [1], [0, 0, 1, 1], [], []>} : vector<16x40xbf16>, vector<40x512xbf16>, vector<16x512xf32> -> vector<16x512xf32>
    %c0_67 = arith.constant 0 : index
    %c0_68 = arith.constant 0 : index
    %101 = vector.load %arg8[%c0_67, %c0_68] : memref<16x1xf32, #tpu.memory_space<vmem>>, vector<16x1xf32>
    %102 = vector.broadcast %101 : vector<16x1xf32> to vector<16x512xf32>
    %103 = arith.addf %100, %102 : vector<16x512xf32>
    %cst_69 = arith.constant 0.000000e+00 : f32
    %104 = vector.broadcast %cst_69 : f32 to vector<16x512xf32>
    %105 = arith.maximumf %103, %104 : vector<16x512xf32>
    %c0_70 = arith.constant 0 : index
    %c0_71 = arith.constant 0 : index
    %106 = vector.load %arg9[%c0_70, %c0_71] : memref<3x16xbf16, #tpu.memory_space<vmem>>, vector<3x16xbf16>
    %107 = arith.truncf %105 : vector<16x512xf32> to vector<16x512xbf16>
    %cst_72 = arith.constant dense<0.000000e+00> : vector<3x512xf32>
    %108 = tpu.matmul %106, %107, %cst_72 {dimension_numbers = #tpu.dot_dimension_numbers<[1], [0], [0], [1], [0, 0, 1, 1], [], []>} : vector<3x16xbf16>, vector<16x512xbf16>, vector<3x512xf32> -> vector<3x512xf32>
    %c0_73 = arith.constant 0 : index
    %c0_74 = arith.constant 0 : index
    %109 = vector.load %arg10[%c0_73, %c0_74] : memref<3x1xf32, #tpu.memory_space<vmem>>, vector<3x1xf32>
    %110 = vector.broadcast %109 : vector<3x1xf32> to vector<3x512xf32>
    %111 = arith.addf %108, %110 : vector<3x512xf32>
    %112 = arith.negf %111 : vector<3x512xf32>
    %113 = math.exp %112 : vector<3x512xf32>
    %cst_75 = arith.constant 1.000000e+00 : f32
    %114 = vector.broadcast %cst_75 : f32 to vector<3x512xf32>
    %115 = arith.addf %114, %113 : vector<3x512xf32>
    %116 = arith.divf %114, %115 : vector<3x512xf32>
    %117 = tpu.concatenate %96, %116 in 0 : vector<1x512xf32>, vector<3x512xf32> -> vector<4x512xf32>
    %c0_76 = arith.constant 0 : index
    %c0_77 = arith.constant 0 : index
    %118 = vector.load %arg11[%c0_76, %c0_77] : memref<4x512xf32, #tpu.memory_space<vmem>>, vector<4x512xf32>
    tpu.vector_store %arg11[%c0_76, %c0_77], %117 {strides = array<i32>} : memref<4x512xf32, #tpu.memory_space<vmem>>, vector<4x512xf32>,
    return
  }
  func.func @transform_0(%arg0: i32) -> (i32, i32) {
    %c0_i32 = arith.constant 0 : i32
    %c0_i32_0 = arith.constant 0 : i32
    return %c0_i32, %arg0 : i32, i32
  }
  func.func @transform_1(%arg0: i32) -> (i32, i32) {
    %c0_i32 = arith.constant 0 : i32
    %c0_i32_0 = arith.constant 0 : i32
    return %c0_i32, %arg0 : i32, i32
  }
  func.func @transform_2(%arg0: i32) -> (i32, i32, i32) {
    %c0_i32 = arith.constant 0 : i32
    %c0_i32_0 = arith.constant 0 : i32
    %c0_i32_1 = arith.constant 0 : i32
    %c0_i32_2 = arith.constant 0 : i32
    return %c0_i32, %c0_i32_0, %c0_i32_1 : i32, i32, i32
  }
  func.func @transform_3(%arg0: i32) -> (i32, i32, i32) {
    %c0_i32 = arith.constant 0 : i32
    %c0_i32_0 = arith.constant 0 : i32
    %c0_i32_1 = arith.constant 0 : i32
    %c0_i32_2 = arith.constant 0 : i32
    return %c0_i32, %c0_i32_0, %c0_i32_1 : i32, i32, i32
  }
  func.func @transform_4(%arg0: i32) -> (i32, i32) {
    %c0_i32 = arith.constant 0 : i32
    %c0_i32_0 = arith.constant 0 : i32
    %c0_i32_1 = arith.constant 0 : i32
    return %c0_i32, %c0_i32_0 : i32, i32
  }
  func.func @transform_5(%arg0: i32) -> (i32, i32) {
    %c0_i32 = arith.constant 0 : i32
    %c0_i32_0 = arith.constant 0 : i32
    %c0_i32_1 = arith.constant 0 : i32
    return %c0_i32, %c0_i32_0 : i32, i32
  }
  func.func @transform_6(%arg0: i32) -> (i32, i32) {
    %c0_i32 = arith.constant 0 : i32
    %c0_i32_0 = arith.constant 0 : i32
    %c0_i32_1 = arith.constant 0 : i32
    return %c0_i32, %c0_i32_0 : i32, i32
  }
  func.func @transform_7(%arg0: i32) -> (i32, i32) {
    %c0_i32 = arith.constant 0 : i32
    %c0_i32_0 = arith.constant 0 : i32
    %c0_i32_1 = arith.constant 0 : i32
    return %c0_i32, %c0_i32_0 : i32, i32
  }
  func.func @transform_8(%arg0: i32) -> (i32, i32) {
    %c0_i32 = arith.constant 0 : i32
    %c0_i32_0 = arith.constant 0 : i32
    %c0_i32_1 = arith.constant 0 : i32
    return %c0_i32, %c0_i32_0 : i32, i32
  }
  func.func @transform_9(%arg0: i32) -> (i32, i32) {
    %c0_i32 = arith.constant 0 : i32
    %c0_i32_0 = arith.constant 0 : i32
    %c0_i32_1 = arith.constant 0 : i32
    return %c0_i32, %c0_i32_0 : i32, i32
  }
  func.func @transform_10(%arg0: i32) -> (i32, i32) {
    %c0_i32 = arith.constant 0 : i32
    %c0_i32_0 = arith.constant 0 : i32
    return %c0_i32, %arg0 : i32, i32
  }
}

</mosaic_0001>

<bundles_post_ra>
// kernel: tpu_custom_call.1
= control target key start
LH: loop header
LB: loop body
LE: loop exit
PB: predicated region body
PF: predicated region fallthrough
CT: control target
= control target key end

     0   :  { %15 = vsyncpa [#allocation4], 0  ;;  %s3175_s0 = inlined_call_operand.vmem [shape: bf16[16,2048], index: 0, kind: input, shape index: {}]   ;;  %s3176_s1 = inlined_call_operand.vmem [shape: bf16[8,2048], index: 1, kind: input, shape index: {}]   ;;  %s3177_s2 = inlined_call_operand.vmem [shape: bf16[8,32,48], index: 2, kind: input, shape index: {}]   ;;  %s3178_s3 = inlined_call_operand.vmem [shape: f32[8,32,1], index: 3, kind: input, shape index: {}]   ;;  %s3179_s4 = inlined_call_operand.vmem [shape: bf16[33,32], index: 4, kind: input, shape index: {}]   ;;  %s3180_s5 = inlined_call_operand.vmem [shape: f32[33,1], index: 5, kind: input, shape index: {}]   ;;  %s3181_s6 = inlined_call_operand.vmem [shape: bf16[16,40], index: 6, kind: input, shape index: {}]   ;;  %s3182_s7 = inlined_call_operand.vmem [shape: f32[16,1], index: 7, kind: input, shape index: {}]   ;;  %s3183_s8 = inlined_call_operand.vmem [shape: bf16[3,16], index: 8, kind: input, shape index: {}]   ;;  %s3184_s9 = inlined_call_operand.vmem [shape: f32[3,1], index: 9, kind: input, shape index: {}]   ;;  %s3185_s10 = inlined_call_operand.hbm [shape: f32[4,2048], index: 10, kind: output, shape index: {}]  }
   0x1   :  { %17 = vsyncpa [#allocation4 + $0x1], 0  ;;  %s2769_s13 = smov 0   ;;  %s2771_s14 = smov 0  }
   0x2   :  { %s2773_s15 = smov 0   ;;  %s2775_s16 = smov 0  }
   0x3 LB: > { %s2790_s17 = sadd.s32 4294967295, %s2710_s16   ;;  %s2410_s18 = sadd.s32 4294967294, %s2710_s16   ;;  %s2710_s16 = sphi %s2775_s16, %s3191_s16   ;;  %s2706_s15 = sphi %s2773_s15, %s3190_s15   ;;  %s2702_s14 = sphi %s2771_s14, %s3189_s14   ;;  %s2698_s13 = sphi %s2769_s13, %s3188_s13  }
   0x4   : > { %s2794_s19 = sadd.s32 1, %s2710_s16   ;;  %s30_s20 = sadd.s32 1, %s2706_s15 }
   0x5   : > { %s27_s21 = ssub.s32 %s2710_s16, %s2794_s19  ;;  %p37_p0 = scmp.ne.s32.totalorder %s2706_s15, %s2702_s14 }
   0x6   : > { %p28_p1 = scmp.eq.s32.totalorder %s27_s21, 0  ;;  %p38_p2 = scmp.eq.s32.totalorder %s2710_s16, 0 }
   0x7   : > { %p261_p3 = scmp.eq.s32.totalorder %s2790_s17, 3  ;;  %p266_p4 = scmp.ne.s32.totalorder %s2702_s14, %s2698_s13 }
   0x8   : > { %s2806_s22 = scalar_select %p28_p1, %s2706_s15, %s30_s20  }
   0x9   : > { %p39_p5 = por %p38_p2, %p37_p0  ;;  %p2808_p6 = por %p261_p3, %p37_p0 }
   0xa   : > { %p267_p7 = scmp.eq.s32.totalorder %s2410_s18, 3  ;;  %p2412_p9 = scmp.ge.s32.totalorder %s2710_s16, 4 }
   0xc   : > { %p2812_p8 = por %p267_p7, %p266_p4  ;;  %307 = sbr.rel (%p2412_p9) target bundleno = 26 (0x1a), region = 48 }
  0x13   : > { %310 = sbr.rel (!%p39_p5) target bundleno = 26 (0x1a), region = 52  ;;  %s312_s25 = sand.u32 (%p39_p5), 1, %s2706_s15  }
  0x14   : > { %s2558_s26 = sshll.u32 (%p39_p5), %s2710_s16, 4  ;;  %s2413_s27 = sshll.u32 (%p39_p5), %s312_s25, 5 }
  0x15   : > { %s317_s30 = scalar_lea.vmem (%p39_p5), %s3175_s0, %s2558_s26  ;;  %s314_s11 = scalar_lea.vmem (%p39_p5), [#allocation2], %s2413_s27 }
  0x16   : > { %v330_v0 = vld [vmem:[%s317_s30] sm:$0xff] (%p39_p5)  ;;  %v332_v1 = vld [vmem:[%s317_s30 + $0x8] sm:$0xff] (%p39_p5) }
  0x17   : > { %v334_v2 = vld [vmem:[%s317_s30 + $0x40] sm:$0xff] (%p39_p5)  ;;  %331 = vst [vmem:[%s314_s11] sm:$0xff] (%p39_p5), %v330_v0  ;;  %333 = vst [vmem:[%s314_s11 + $0x8] sm:$0xff] (%p39_p5), %v332_v1  ;;  %v336_v3 = vld [vmem:[%s317_s30 + $0x48] sm:$0xff] (%p39_p5) }
  0x18   : > { %335 = vst [vmem:[%s314_s11 + $0x10] sm:$0xff] (%p39_p5), %v334_v2  ;;  %337 = vst [vmem:[%s314_s11 + $0x18] sm:$0xff] (%p39_p5), %v336_v3 }
  0x1a PF: > { %p2416_p10 = scmp.ge.s32.totalorder %s2710_s16, 1  ;;  %p351_p11 = scmp.lt.s32.totalorder %s2710_s16, 5 }
  0x1c   : > { %p352_p12 = pnand %p2416_p10, %p351_p11 }
  0x1d   : > { %s2825_s12 = sand.u32 (!%p352_p12), 1, %s2702_s14   ;;  %v2712_v4 = vmov (!%p352_p12), 0   ;;  %v419_v5 = vld [vmem:[%s3178_s3] sm:$0xff] (!%p352_p12)  ;;  %v421_v6 = vld [vmem:[%s3178_s3 + $0x10] sm:$0xff] (!%p352_p12)  ;;  %v420_v11 = vld [vmem:[%s3178_s3 + $0x8] sm:$0xff] (!%p352_p12)  ;;  %vm473_vm0 = vcmask (!%p352_p12), 130048  }
  0x1e   : > { %355 = sbr.rel (%p352_p12) target bundleno = 2627 (0xa43), region = 79  ;;  %s2417_s18 = sshll.u32 (!%p352_p12), %s2825_s12, 5  ;;  %512 = vmatprep.mubr.bf16.mxu0 (!%p352_p12), %v2712_v4  ;;  %565 = vmatprep.mubr.bf16.mxu1 (!%p352_p12), %v2712_v4  ;;  %v2608_v12 = vld [vmem:[%s3177_s2] sm:$0xff] (!%p352_p12)   ;;  %v422_v13 = vld [vmem:[%s3178_s3 + $0x18] sm:$0xff] (!%p352_p12)  ;;  %v2436_v15 = vld [vmem:[%s3178_s3 + $0x28] sm:$0xff] (!%p352_p12)  ;;  %vm650_vm1 = vcmask (!%p352_p12), 261120  }
  0x1f   : > { %2600 = vset.pattern.permute.xlu0 (!%p352_p12), %v2712_v4  ;;  %2601 = vset.pattern.permute.xlu1 (!%p352_p12), %v2712_v4  ;;  %s360_s27 = scalar_lea.vmem (!%p352_p12), [#allocation2], %s2417_s18  ;;  %v2435_v14 = vld [vmem:[%s3178_s3 + $0x20] sm:$0xff] (!%p352_p12)  ;;  %v2437_v16 = vld [vmem:[%s3178_s3 + $0x30] sm:$0xff] (!%p352_p12)  ;;  %v2438_v17 = vld [vmem:[%s3178_s3 + $0x38] sm:$0xff] (!%p352_p12)  ;;  %vm1179_vm2 = vcmask (!%p352_p12), 392192   ;;  %s2419_s18 = sshll.u32 (!%p352_p12), %s2790_s17, 2 }
  0x20   : > { %v2838_v7 = vld [vmem:[%s360_s27 + $0x4] ss:$16 sps:$4 sm:$0xff] (!%p352_p12)   ;;  %425 = vperm.xlu0 (!%p352_p12), %2600, %v419_v5   ;;  %435 = vperm.xlu1 (!%p352_p12), %2601, %v421_v6   ;;  %v2840_v8 = vld [vmem:[%s360_s27 + $0xc] ss:$16 sps:$4 sm:$0xff] (!%p352_p12)   ;;  %v2843_v9 = vld [vmem:[%s360_s27] ss:$16 sps:$4 sm:$0xff] (!%p352_p12)  }
  0x21   : > { %480 = vmatprep.subr.bf16.mxu0 (!%p352_p12), %v2838_v7  ;;  %v2845_v10 = vld [vmem:[%s360_s27 + $0x8] ss:$16 sps:$4 sm:$0xff] (!%p352_p12)   ;;  %533 = vmatprep.subr.bf16.mxu1 (!%p352_p12), %v2840_v8  ;;  %v2449_v19 = vld [vmem:[%s3178_s3 + $0x40] sm:$0xff] (!%p352_p12)  ;;  %v2451_v21 = vld [vmem:[%s3178_s3 + $0x50] sm:$0xff] (!%p352_p12)  ;;  %p402_p13 = scmp.lt.s32.totalorder (!%p352_p12), %s2419_s18, 15  ;;  %vm2064_vm3 = vcmask (!%p352_p12), 1043456  }
  0x22   : > { %481 = vmatpush1.bf16.msra.mxu0 (!%p352_p12), %v2843_v9  ;;  %534 = vmatpush1.bf16.msra.mxu1 (!%p352_p12), %v2845_v10  ;;  %v2609_v18 = vld [vmem:[%s3177_s2 + $0x8] sm:$0xff] (!%p352_p12)   ;;  %v2452_v22 = vld [vmem:[%s3178_s3 + $0x58] sm:$0xff] (!%p352_p12)  ;;  %v2463_v23 = vld [vmem:[%s3178_s3 + $0x60] sm:$0xff] (!%p352_p12)  ;;  %vm2060_vm4 = vcmask (!%p352_p12), 326656   ;;  %s2418_s11 = sshll.u32 (!%p352_p12), %s2825_s12, 4  ;;  %vm2303_vm5 = vcmask (!%p352_p12), 1040384  }
  0x23   : > { %v2450_v20 = vld [vmem:[%s3178_s3 + $0x48] sm:$0xff] (!%p352_p12)  ;;  %v2465_v25 = vld [vmem:[%s3178_s3 + $0x70] sm:$0xff] (!%p352_p12)  ;;  %v2466_v26 = vld [vmem:[%s3178_s3 + $0x78] sm:$0xff] (!%p352_p12)  ;;  %s2713_s29 = smov (!%p352_p12), [#allocation3]  }
  0x24   : > { %430 = vperm.xlu0 (!%p352_p12), %2600, %v420_v11   ;;  %440 = vperm.xlu1 (!%p352_p12), %2601, %v422_v13   ;;  %v2464_v24 = vld [vmem:[%s3178_s3 + $0x68] sm:$0xff] (!%p352_p12)  ;;  %v2477_v27 = vld [vmem:[%s3178_s3 + $0x80] sm:$0xff] (!%p352_p12)  ;;  %v2479_v29 = vld [vmem:[%s3178_s3 + $0x90] sm:$0xff] (!%p352_p12)  ;;  %s2652_s30 = sshll.u32 (!%p352_p12), %s2713_s29, 4  ;;  %s2653_s30 = int_to_ptr.vmem [resolvable:$false] %s2652_s30 }
  0x25   : > { %2427 = vmatmul.mubr.msk.bf16.vlgmr.msra.gmra.mrb[0].mxu0 %vm473_vm0, %v2608_v12  ;;  %2429 = vmatmul.mubr.msk.bf16.vlgmr.msra.gmra.mrb[0].mxu1 %vm473_vm0, %v2608_v12  ;;  %v2478_v28 = vld [vmem:[%s3178_s3 + $0x88] sm:$0xff]  ;;  %v2480_v30 = vld [vmem:[%s3178_s3 + $0x98] sm:$0xff]  ;;  %v2491_v31 = vld [vmem:[%s3178_s3 + $0xa0] sm:$0xff]  ;;  %s3193_s18 = smov (!%p402_p13, %s2419_s18), 15 }
  0x26   : > { %522 = vmatprep.mubr.bf16.mxu0 %v2712_v4  ;;  %575 = vmatprep.mubr.bf16.mxu1 %v2712_v4  ;;  %v2492_v32 = vld [vmem:[%s3178_s3 + $0xa8] sm:$0xff]  ;;  %v2493_v33 = vld [vmem:[%s3178_s3 + $0xb0] sm:$0xff]  ;;  %v2494_v34 = vld [vmem:[%s3178_s3 + $0xb8] sm:$0xff]  ;;  %s2420_s20 = sshll.u32 %s3193_s18, 2  ;;  %s2559_s18 = sshll.u32 %s2790_s17, 8 }
  0x27   : > { %v2505_v35 = vld [vmem:[%s3178_s3 + $0xc0] sm:$0xff]  ;;  %v2506_v36 = vld [vmem:[%s3178_s3 + $0xc8] sm:$0xff]  ;;  %v2507_v37 = vld [vmem:[%s3178_s3 + $0xd0] sm:$0xff]  ;;  %s405_s26 = scalar_lea.vmem %s3176_s1, %s2420_s20  ;;  %s399_s20 = scalar_lea.vmem [#allocation3], %s2418_s11 }
  0x28   : > { %622 = vperm.xlu0 %2600, %v2435_v14   ;;  %627 = vperm.xlu1 %2601, %v2436_v15   ;;  %v2508_v38 = vld [vmem:[%s3178_s3 + $0xd8] sm:$0xff]  ;;  %v2519_v39 = vld [vmem:[%s3178_s3 + $0xe0] sm:$0xff]  ;;  %v2520_v40 = vld [vmem:[%s3178_s3 + $0xe8] sm:$0xff]  ;;  %s2333_s21 = sshll.u32 %s399_s20, 4  ;;  %s3132_s27 = scalar_lea.hbm %s3185_s10, %s2559_s18  ;;  %s3134_s21 = int_to_ptr.vmem [resolvable:$true] %s2333_s21 }
  0x29   : > { %v2521_v41 = vld [vmem:[%s3178_s3 + $0xf0] sm:$0xff]  ;;  %v2522_v42 = vld [vmem:[%s3178_s3 + $0xf8] sm:$0xff]  ;;  %v1849_v43 = vld [vmem:[%s3180_s5] sm:$0xff]  ;;  %s2319_s17 = scalar_lea.sflag [#allocation4], %s2825_s12  ;;  %s2648_s28 = scalar_lea.vmem %s3134_s21, 256 }
  0x2a   : > { %v1850_v44 = vld [vmem:[%s3180_s5 + $0x8] sm:$0xff]  ;;  %v1851_v45 = vld [vmem:[%s3180_s5 + $0x10] sm:$0xff]  ;;  %v1852_v46 = vld [vmem:[%s3180_s5 + $0x18] sm:$0xff]  ;;  %p2649_p0 = scmp.ne.s32.totalorder %s3134_s21, %s2648_s28  ;;  %s2654_s11 = scalar_lea.vmem %s2653_s30, 512 }
  0x2b   : > { %v2043_v47 = vld [vmem:[%s3182_s7] sm:$0xff]  ;;  %v2044_v48 = vld [vmem:[%s3182_s7 + $0x8] sm:$0xff]  ;;  %p2655_p3 = scmp.lt.s32.totalorder %s3134_s21, %s2653_s30  ;;  %p2656_p4 = scmp.lt.s32.totalorder %s2654_s11, %s2648_s28 }
  0x2c   : > { %632 = vperm.xlu0 %2600, %v2437_v16   ;;  %637 = vperm.xlu1 %2601, %v2438_v17   ;;  %v2176_v49 = vld [vmem:[%s3184_s9] sm:$0x7]  ;;  %p2650_p1 = pnand %p2649_p0, %p2808_p6 }
  0x2d   : > { %2428 = vmatmul.mubr.msk.bf16.gmra.mrb[4].mxu0 %vm473_vm0, %v2609_v18  ;;  %2430 = vmatmul.mubr.msk.bf16.gmra.mrb[4].mxu1 %vm473_vm0, %v2609_v18  ;;  %v1853_v50 = vld [vmem:[%s3180_s5 + $0x20] sm:$0x1]  ;;  %p2657_p5 = por %p2656_p4, %p2655_p3 }
  0x2e   : > { %689 = vmatprep.mubr.bf16.mxu0 %v2712_v4  ;;  %742 = vmatprep.mubr.bf16.mxu1 %v2712_v4  ;;  %p2651_p2 = pneg %p2650_p1 }
  0x30   : > { %799 = vperm.xlu0 %2600, %v2449_v19   ;;  %804 = vperm.xlu1 %2601, %v2450_v20   ;;  %p2658_p7 = pnand %p2657_p5, %p2651_p2 }
  0x34   : > { %809 = vperm.xlu0 %2600, %v2451_v21   ;;  %814 = vperm.xlu1 %2601, %v2452_v22  }
  0x38   : > { %975 = vperm.xlu0 %2600, %v2463_v23   ;;  %980 = vperm.xlu1 %2601, %v2464_v24  }
  0x3c   : > { %985 = vperm.xlu0 %2600, %v2465_v25   ;;  %990 = vperm.xlu1 %2601, %v2466_v26  }
  0x40   : > { %1151 = vperm.xlu0 %2600, %v2477_v27   ;;  %1156 = vperm.xlu1 %2601, %v2478_v28  }
  0x44   : > { %1161 = vperm.xlu0 %2600, %v2479_v29   ;;  %1166 = vperm.xlu1 %2601, %v2480_v30  }
  0x48   : > { %1328 = vperm.xlu0 %2600, %v2491_v31   ;;  %1333 = vperm.xlu1 %2601, %v2492_v32  }
  0x4c   : > { %1338 = vperm.xlu0 %2600, %v2493_v33   ;;  %1343 = vperm.xlu1 %2601, %v2494_v34  }
  0x50   : > { %1504 = vperm.xlu0 %2600, %v2505_v35   ;;  %1509 = vperm.xlu1 %2601, %v2506_v36  }
  0x54   : > { %1514 = vperm.xlu0 %2600, %v2507_v37   ;;  %1519 = vperm.xlu1 %2601, %v2508_v38  }
  0x58   : > { %1680 = vperm.xlu0 %2600, %v2519_v39   ;;  %1685 = vperm.xlu1 %2601, %v2520_v40  }
  0x5c   : > { %1690 = vperm.xlu0 %2600, %v2521_v41   ;;  %1695 = vperm.xlu1 %2601, %v2522_v42  }
  0x60   : > { %1856 = vperm.xlu0 %2600, %v1849_v43   ;;  %1861 = vperm.xlu1 %2601, %v1850_v44  }
  0x64   : > { %1866 = vperm.xlu0 %2600, %v1851_v45   ;;  %1871 = vperm.xlu1 %2601, %v1852_v46  }
  0x68   : > { %2047 = vperm.xlu0 %2600, %v2043_v47   ;;  %2052 = vperm.xlu1 %2601, %v2044_v48  }
  0x6c   : > { %2179 = vperm.xlu0 %2600, %v2176_v49   ;;  %1876 = vperm.xlu1 %2601, %v1853_v50  }
  0x9f   : > { %v426_v51 = vpop.permute.xlu0 %425  ;;  %v436_v52 = vpop.permute.xlu1 %435 }
  0xa3   : > { %v431_v53 = vpop.permute.xlu0 %430  ;;  %v441_v19 = vpop.permute.xlu1 %440 }
  0xf8   : > { %v514_v54 = vpop.f32.mrb[0].mxu0  ;;  %v567_v55 = vpop.f32.mrb[0].mxu1 }
  0xf9   : > { %v515_v56 = vadd.f32 %v514_v54, %v426_v51  ;;  %v568_v57 = vadd.f32 %v567_v55, %v426_v51  ;;  %v516_v58 = vpop.f32.mrb[1].mxu0  ;;  %v569_v59 = vpop.f32.mrb[1].mxu1 }
  0xfa   : > { %v517_v60 = vadd.f32 %v516_v58, %v426_v51  ;;  %v570_v61 = vadd.f32 %v569_v59, %v426_v51  ;;  %v518_v62 = vpop.f32.mrb[2].mxu0  ;;  %v571_v63 = vpop.f32.mrb[2].mxu1 }
  0xfb   : > { %v519_v0 = vadd.f32 %v518_v62, %v431_v53  ;;  %v572_v1 = vadd.f32 %v571_v63, %v431_v53  ;;  %v520_v2 = vpop.f32.mrb[3].mxu0  ;;  %v573_v3 = vpop.f32.mrb[3].mxu1  ;;  %v586_v11 = vmax.f32 %v515_v56, 0.0  ;;  %v588_v12 = vmax.f32 %v568_v57, 0.0 }
  0xfc   : > { %v521_v5 = vadd.f32 %v520_v2, %v431_v53  ;;  %v574_v6 = vadd.f32 %v573_v3, %v431_v53  ;;  %v587_v15 = vmax.f32 %v517_v60, 0.0  ;;  %v589_v16 = vmax.f32 %v570_v61, 0.0  ;;  %v2611_v53 = vld [vmem:[%s3177_s2 + $0x18] sm:$0xff]   ;;  %v623_v54 = vpop.permute.xlu0 %622  ;;  %v628_v55 = vpop.permute.xlu1 %627 }
  0xfd   : > { %v590_v13 = vmax.f32 %v519_v0, 0.0  ;;  %v592_v14 = vmax.f32 %v572_v1, 0.0 }
  0xfe   : > { %v591_v17 = vmax.f32 %v521_v5, 0.0  ;;  %v593_v18 = vmax.f32 %v574_v6, 0.0 }
  0xff   : > { %v607_v20 = vpack.c.bf16 %v590_v13, %v586_v11  ;;  %v609_v21 = vpack.c.bf16 %v592_v14, %v588_v12 }
 0x100   : > { %v608_v22 = vpack.c.bf16 %v591_v17, %v587_v15  ;;  %v610_v23 = vpack.c.bf16 %v593_v18, %v589_v16  ;;  %v524_v24 = vpop.f32.mrb[4].mxu0  ;;  %v577_v25 = vpop.f32.mrb[4].mxu1 }
 0x101   : > { %v525_v26 = vadd.f32 %v524_v24, %v436_v52  ;;  %v578_v27 = vadd.f32 %v577_v25, %v436_v52  ;;  %v526_v28 = vpop.f32.mrb[5].mxu0  ;;  %v579_v29 = vpop.f32.mrb[5].mxu1 }
 0x102   : > { %v527_v30 = vadd.f32 %v526_v28, %v436_v52  ;;  %v580_v31 = vadd.f32 %v579_v29, %v436_v52  ;;  %v528_v32 = vpop.f32.mrb[6].mxu0  ;;  %v581_v33 = vpop.f32.mrb[6].mxu1  ;;  %657 = vmatprep.subr.bf16.mxu0 %v608_v22  ;;  %710 = vmatprep.subr.bf16.mxu1 %v610_v23  ;;  %v2610_v52 = vld [vmem:[%s3177_s2 + $0x10] sm:$0xff]  }
 0x103   : > { %v529_v34 = vadd.f32 %v528_v32, %v441_v19  ;;  %v582_v35 = vadd.f32 %v581_v33, %v441_v19  ;;  %v530_v36 = vpop.f32.mrb[7].mxu0  ;;  %v583_v37 = vpop.f32.mrb[7].mxu1  ;;  %658 = vmatpush1.bf16.msra.mxu0 %v607_v20  ;;  %711 = vmatpush1.bf16.msra.mxu1 %v609_v21  ;;  %v594_v40 = vmax.f32 %v525_v26, 0.0  ;;  %v596_v41 = vmax.f32 %v578_v27, 0.0 }
 0x104   : > { %v531_v38 = vadd.f32 %v530_v36, %v441_v19  ;;  %v584_v39 = vadd.f32 %v583_v37, %v441_v19  ;;  %v595_v44 = vmax.f32 %v527_v30, 0.0  ;;  %v597_v45 = vmax.f32 %v580_v31, 0.0  ;;  %v633_v21 = vpop.permute.xlu0 %632  ;;  %v638_v22 = vpop.permute.xlu1 %637 }
 0x105   : > { %v598_v42 = vmax.f32 %v529_v34, 0.0  ;;  %v600_v43 = vmax.f32 %v582_v35, 0.0 }
 0x106   : > { %v599_v46 = vmax.f32 %v531_v38, 0.0  ;;  %v601_v47 = vmax.f32 %v584_v39, 0.0 }
 0x107   : > { %v611_v48 = vpack.c.bf16 %v598_v42, %v594_v40  ;;  %v613_v49 = vpack.c.bf16 %v600_v43, %v596_v41 }
 0x108   : > { %v612_v50 = vpack.c.bf16 %v599_v46, %v595_v44  ;;  %v614_v51 = vpack.c.bf16 %v601_v47, %v597_v45 }
 0x10a   : > { %659 = vmatprep.subr.bf16.mxu0 %v612_v50  ;;  %712 = vmatprep.subr.bf16.mxu1 %v614_v51 }
 0x10b   : > { %660 = vmatpush1.bf16.msra.mxu0 %v611_v48  ;;  %713 = vmatpush1.bf16.msra.mxu1 %v613_v49 }
 0x10e   : > { %2441 = vmatmul.mubr.msk.bf16.vlgmr.msra.gmra.mrb[8].mxu0 %vm650_vm1, %v2610_v52  ;;  %2443 = vmatmul.mubr.msk.bf16.vlgmr.msra.gmra.mrb[8].mxu1 %vm650_vm1, %v2610_v52 }
 0x10f   : > { %699 = vmatprep.mubr.bf16.mxu0 %v2712_v4  ;;  %752 = vmatprep.mubr.bf16.mxu1 %v2712_v4 }
 0x116   : > { %2442 = vmatmul.mubr.msk.bf16.gmra.mrb[12].mxu0 %vm650_vm1, %v2611_v53  ;;  %2444 = vmatmul.mubr.msk.bf16.gmra.mrb[12].mxu1 %vm650_vm1, %v2611_v53 }
 0x117   : > { %865 = vmatprep.mubr.bf16.mxu0 %v2712_v4  ;;  %918 = vmatprep.mubr.bf16.mxu1 %v2712_v4 }
 0x1e1   : > { %v691_v56 = vpop.f32.mrb[8].mxu0  ;;  %v744_v57 = vpop.f32.mrb[8].mxu1 }
 0x1e2   : > { %v692_v58 = vadd.f32 %v691_v56, %v623_v54  ;;  %v745_v59 = vadd.f32 %v744_v57, %v623_v54  ;;  %v693_v60 = vpop.f32.mrb[9].mxu0  ;;  %v746_v61 = vpop.f32.mrb[9].mxu1  ;;  %v2613_v56 = vld [vmem:[%s3177_s2 + $0x28] sm:$0xff]  }
 0x1e3   : > { %v694_v62 = vadd.f32 %v693_v60, %v623_v54  ;;  %v747_v63 = vadd.f32 %v746_v61, %v623_v54  ;;  %v695_v0 = vpop.f32.mrb[10].mxu0  ;;  %v748_v1 = vpop.f32.mrb[10].mxu1 }
 0x1e4   : > { %v696_v2 = vadd.f32 %v695_v0, %v628_v55  ;;  %v749_v3 = vadd.f32 %v748_v1, %v628_v55  ;;  %v697_v5 = vpop.f32.mrb[11].mxu0  ;;  %v750_v6 = vpop.f32.mrb[11].mxu1  ;;  %v763_v13 = vmax.f32 %v692_v58, 0.0  ;;  %v765_v14 = vmax.f32 %v745_v59, 0.0 }
 0x1e5   : > { %v698_v11 = vadd.f32 %v697_v5, %v628_v55  ;;  %v751_v12 = vadd.f32 %v750_v6, %v628_v55  ;;  %v764_v17 = vmax.f32 %v694_v62, 0.0  ;;  %v766_v18 = vmax.f32 %v747_v63, 0.0  ;;  %v2612_v55 = vld [vmem:[%s3177_s2 + $0x20] sm:$0xff]   ;;  %v800_v57 = vpop.permute.xlu0 %799  ;;  %v805_v58 = vpop.permute.xlu1 %804 }
 0x1e6   : > { %v767_v15 = vmax.f32 %v696_v2, 0.0  ;;  %v769_v16 = vmax.f32 %v749_v3, 0.0 }
 0x1e7   : > { %v768_v19 = vmax.f32 %v698_v11, 0.0  ;;  %v770_v20 = vmax.f32 %v751_v12, 0.0 }
 0x1e8   : > { %v784_v23 = vpack.c.bf16 %v767_v15, %v763_v13  ;;  %v786_v24 = vpack.c.bf16 %v769_v16, %v765_v14 }
 0x1e9   : > { %v785_v25 = vpack.c.bf16 %v768_v19, %v764_v17  ;;  %v787_v26 = vpack.c.bf16 %v770_v20, %v766_v18  ;;  %v701_v27 = vpop.f32.mrb[12].mxu0  ;;  %v754_v28 = vpop.f32.mrb[12].mxu1 }
 0x1ea   : > { %v702_v29 = vadd.f32 %v701_v27, %v633_v21  ;;  %v755_v30 = vadd.f32 %v754_v28, %v633_v21  ;;  %v703_v31 = vpop.f32.mrb[13].mxu0  ;;  %v756_v32 = vpop.f32.mrb[13].mxu1 }
 0x1eb   : > { %v704_v33 = vadd.f32 %v703_v31, %v633_v21  ;;  %v757_v34 = vadd.f32 %v756_v32, %v633_v21  ;;  %v705_v35 = vpop.f32.mrb[14].mxu0  ;;  %v758_v36 = vpop.f32.mrb[14].mxu1  ;;  %833 = vmatprep.subr.bf16.mxu0 %v785_v25  ;;  %886 = vmatprep.subr.bf16.mxu1 %v787_v26 }
 0x1ec   : > { %v706_v37 = vadd.f32 %v705_v35, %v638_v22  ;;  %v759_v38 = vadd.f32 %v758_v36, %v638_v22  ;;  %v707_v39 = vpop.f32.mrb[15].mxu0  ;;  %v760_v40 = vpop.f32.mrb[15].mxu1  ;;  %834 = vmatpush1.bf16.msra.mxu0 %v784_v23  ;;  %887 = vmatpush1.bf16.msra.mxu1 %v786_v24  ;;  %v771_v43 = vmax.f32 %v702_v29, 0.0  ;;  %v773_v44 = vmax.f32 %v755_v30, 0.0 }
 0x1ed   : > { %v708_v41 = vadd.f32 %v707_v39, %v638_v22  ;;  %v761_v42 = vadd.f32 %v760_v40, %v638_v22  ;;  %v772_v47 = vmax.f32 %v704_v33, 0.0  ;;  %v774_v48 = vmax.f32 %v757_v34, 0.0  ;;  %v810_v24 = vpop.permute.xlu0 %809  ;;  %v815_v25 = vpop.permute.xlu1 %814 }
 0x1ee   : > { %v775_v45 = vmax.f32 %v706_v37, 0.0  ;;  %v777_v46 = vmax.f32 %v759_v38, 0.0 }
 0x1ef   : > { %v776_v49 = vmax.f32 %v708_v41, 0.0  ;;  %v778_v50 = vmax.f32 %v761_v42, 0.0 }
 0x1f0   : > { %v788_v51 = vpack.c.bf16 %v775_v45, %v771_v43  ;;  %v790_v52 = vpack.c.bf16 %v777_v46, %v773_v44 }
 0x1f1   : > { %v789_v53 = vpack.c.bf16 %v776_v49, %v772_v47  ;;  %v791_v54 = vpack.c.bf16 %v778_v50, %v774_v48 }
 0x1f3   : > { %835 = vmatprep.subr.bf16.mxu0 %v789_v53  ;;  %888 = vmatprep.subr.bf16.mxu1 %v791_v54 }
 0x1f4   : > { %836 = vmatpush1.bf16.msra.mxu0 %v788_v51  ;;  %889 = vmatpush1.bf16.msra.mxu1 %v790_v52 }
 0x1f7   : > { %2455 = vmatmul.mubr.msk.bf16.vlgmr.msra.gmra.mrb[16].mxu0 %vm650_vm1, %v2612_v55  ;;  %2457 = vmatmul.mubr.msk.bf16.vlgmr.msra.gmra.mrb[16].mxu1 %vm650_vm1, %v2612_v55 }
 0x1f8   : > { %875 = vmatprep.mubr.bf16.mxu0 %v2712_v4  ;;  %928 = vmatprep.mubr.bf16.mxu1 %v2712_v4 }
 0x1ff   : > { %2456 = vmatmul.mubr.msk.bf16.gmra.mrb[20].mxu0 %vm650_vm1, %v2613_v56  ;;  %2458 = vmatmul.mubr.msk.bf16.gmra.mrb[20].mxu1 %vm650_vm1, %v2613_v56 }
 0x200   : > { %1041 = vmatprep.mubr.bf16.mxu0 %v2712_v4  ;;  %1094 = vmatprep.mubr.bf16.mxu1 %v2712_v4 }
 0x2ca   : > { %v867_v59 = vpop.f32.mrb[16].mxu0  ;;  %v920_v60 = vpop.f32.mrb[16].mxu1 }
 0x2cb   : > { %v868_v61 = vadd.f32 %v867_v59, %v800_v57  ;;  %v921_v62 = vadd.f32 %v920_v60, %v800_v57  ;;  %v869_v63 = vpop.f32.mrb[17].mxu0  ;;  %v922_v0 = vpop.f32.mrb[17].mxu1  ;;  %v2615_v59 = vld [vmem:[%s3177_s2 + $0x38] sm:$0xff]  }
 0x2cc   : > { %v870_v1 = vadd.f32 %v869_v63, %v800_v57  ;;  %v923_v2 = vadd.f32 %v922_v0, %v800_v57  ;;  %v871_v3 = vpop.f32.mrb[18].mxu0  ;;  %v924_v5 = vpop.f32.mrb[18].mxu1 }
 0x2cd   : > { %v872_v6 = vadd.f32 %v871_v3, %v805_v58  ;;  %v925_v11 = vadd.f32 %v924_v5, %v805_v58  ;;  %v873_v12 = vpop.f32.mrb[19].mxu0  ;;  %v926_v13 = vpop.f32.mrb[19].mxu1  ;;  %v939_v16 = vmax.f32 %v868_v61, 0.0  ;;  %v941_v17 = vmax.f32 %v921_v62, 0.0 }
 0x2ce   : > { %v874_v14 = vadd.f32 %v873_v12, %v805_v58  ;;  %v927_v15 = vadd.f32 %v926_v13, %v805_v58  ;;  %v940_v20 = vmax.f32 %v870_v1, 0.0  ;;  %v942_v21 = vmax.f32 %v923_v2, 0.0  ;;  %v2614_v58 = vld [vmem:[%s3177_s2 + $0x30] sm:$0xff]   ;;  %v976_v60 = vpop.permute.xlu0 %975  ;;  %v981_v61 = vpop.permute.xlu1 %980 }
 0x2cf   : > { %v943_v18 = vmax.f32 %v872_v6, 0.0  ;;  %v945_v19 = vmax.f32 %v925_v11, 0.0 }
 0x2d0   : > { %v944_v22 = vmax.f32 %v874_v14, 0.0  ;;  %v946_v23 = vmax.f32 %v927_v15, 0.0 }
 0x2d1   : > { %v960_v26 = vpack.c.bf16 %v943_v18, %v939_v16  ;;  %v962_v27 = vpack.c.bf16 %v945_v19, %v941_v17 }
 0x2d2   : > { %v961_v28 = vpack.c.bf16 %v944_v22, %v940_v20  ;;  %v963_v29 = vpack.c.bf16 %v946_v23, %v942_v21  ;;  %v877_v30 = vpop.f32.mrb[20].mxu0  ;;  %v930_v31 = vpop.f32.mrb[20].mxu1 }
 0x2d3   : > { %v878_v32 = vadd.f32 %v877_v30, %v810_v24  ;;  %v931_v33 = vadd.f32 %v930_v31, %v810_v24  ;;  %v879_v34 = vpop.f32.mrb[21].mxu0  ;;  %v932_v35 = vpop.f32.mrb[21].mxu1 }
 0x2d4   : > { %v880_v36 = vadd.f32 %v879_v34, %v810_v24  ;;  %v933_v37 = vadd.f32 %v932_v35, %v810_v24  ;;  %v881_v38 = vpop.f32.mrb[22].mxu0  ;;  %v934_v39 = vpop.f32.mrb[22].mxu1  ;;  %1009 = vmatprep.subr.bf16.mxu0 %v961_v28  ;;  %1062 = vmatprep.subr.bf16.mxu1 %v963_v29 }
 0x2d5   : > { %v882_v40 = vadd.f32 %v881_v38, %v815_v25  ;;  %v935_v41 = vadd.f32 %v934_v39, %v815_v25  ;;  %v883_v42 = vpop.f32.mrb[23].mxu0  ;;  %v936_v43 = vpop.f32.mrb[23].mxu1  ;;  %1010 = vmatpush1.bf16.msra.mxu0 %v960_v26  ;;  %1063 = vmatpush1.bf16.msra.mxu1 %v962_v27  ;;  %v947_v46 = vmax.f32 %v878_v32, 0.0  ;;  %v949_v47 = vmax.f32 %v931_v33, 0.0 }
 0x2d6   : > { %v884_v44 = vadd.f32 %v883_v42, %v815_v25  ;;  %v937_v45 = vadd.f32 %v936_v43, %v815_v25  ;;  %v948_v50 = vmax.f32 %v880_v36, 0.0  ;;  %v950_v51 = vmax.f32 %v933_v37, 0.0  ;;  %v986_v27 = vpop.permute.xlu0 %985  ;;  %v991_v28 = vpop.permute.xlu1 %990 }
 0x2d7   : > { %v951_v48 = vmax.f32 %v882_v40, 0.0  ;;  %v953_v49 = vmax.f32 %v935_v41, 0.0 }
 0x2d8   : > { %v952_v52 = vmax.f32 %v884_v44, 0.0  ;;  %v954_v53 = vmax.f32 %v937_v45, 0.0 }
 0x2d9   : > { %v964_v54 = vpack.c.bf16 %v951_v48, %v947_v46  ;;  %v966_v55 = vpack.c.bf16 %v953_v49, %v949_v47 }
 0x2da   : > { %v965_v56 = vpack.c.bf16 %v952_v52, %v948_v50  ;;  %v967_v57 = vpack.c.bf16 %v954_v53, %v950_v51 }
 0x2dc   : > { %1011 = vmatprep.subr.bf16.mxu0 %v965_v56  ;;  %1064 = vmatprep.subr.bf16.mxu1 %v967_v57 }
 0x2dd   : > { %1012 = vmatpush1.bf16.msra.mxu0 %v964_v54  ;;  %1065 = vmatpush1.bf16.msra.mxu1 %v966_v55 }
 0x2e0   : > { %2469 = vmatmul.mubr.msk.bf16.vlgmr.msra.gmra.mrb[24].mxu0 %vm650_vm1, %v2614_v58  ;;  %2471 = vmatmul.mubr.msk.bf16.vlgmr.msra.gmra.mrb[24].mxu1 %vm650_vm1, %v2614_v58 }
 0x2e1   : > { %1051 = vmatprep.mubr.bf16.mxu0 %v2712_v4  ;;  %1104 = vmatprep.mubr.bf16.mxu1 %v2712_v4 }
 0x2e8   : > { %2470 = vmatmul.mubr.msk.bf16.gmra.mrb[28].mxu0 %vm650_vm1, %v2615_v59  ;;  %2472 = vmatmul.mubr.msk.bf16.gmra.mrb[28].mxu1 %vm650_vm1, %v2615_v59 }
 0x2e9   : > { %1218 = vmatprep.mubr.bf16.mxu0 %v2712_v4  ;;  %1271 = vmatprep.mubr.bf16.mxu1 %v2712_v4 }
 0x3b3   : > { %v1043_v62 = vpop.f32.mrb[24].mxu0  ;;  %v1096_v63 = vpop.f32.mrb[24].mxu1 }
 0x3b4   : > { %v1044_v0 = vadd.f32 %v1043_v62, %v976_v60  ;;  %v1097_v1 = vadd.f32 %v1096_v63, %v976_v60  ;;  %v1045_v2 = vpop.f32.mrb[25].mxu0  ;;  %v1098_v3 = vpop.f32.mrb[25].mxu1 }
 0x3b5   : > { %v1046_v5 = vadd.f32 %v1045_v2, %v976_v60  ;;  %v1099_v6 = vadd.f32 %v1098_v3, %v976_v60  ;;  %v1047_v11 = vpop.f32.mrb[26].mxu0  ;;  %v1100_v12 = vpop.f32.mrb[26].mxu1 }
 0x3b6   : > { %v1048_v13 = vadd.f32 %v1047_v11, %v981_v61  ;;  %v1101_v14 = vadd.f32 %v1100_v12, %v981_v61  ;;  %v1049_v15 = vpop.f32.mrb[27].mxu0  ;;  %v1102_v16 = vpop.f32.mrb[27].mxu1  ;;  %v1115_v19 = vmax.f32 %v1044_v0, 0.0  ;;  %v1117_v20 = vmax.f32 %v1097_v1, 0.0 }
 0x3b7   : > { %v1050_v17 = vadd.f32 %v1049_v15, %v981_v61  ;;  %v1103_v18 = vadd.f32 %v1102_v16, %v981_v61  ;;  %v1116_v23 = vmax.f32 %v1046_v5, 0.0  ;;  %v1118_v24 = vmax.f32 %v1099_v6, 0.0  ;;  %v2616_v61 = vld [vmem:[%s3177_s2 + $0x40] sm:$0xff]  }
 0x3b8   : > { %v1119_v21 = vmax.f32 %v1048_v13, 0.0  ;;  %v1121_v22 = vmax.f32 %v1101_v14, 0.0 }
 0x3b9   : > { %v1120_v25 = vmax.f32 %v1050_v17, 0.0  ;;  %v1122_v26 = vmax.f32 %v1103_v18, 0.0 }
 0x3ba   : > { %v1136_v29 = vpack.c.bf16 %v1119_v21, %v1115_v19  ;;  %v1138_v30 = vpack.c.bf16 %v1121_v22, %v1117_v20 }
 0x3bb   : > { %v1137_v31 = vpack.c.bf16 %v1120_v25, %v1116_v23  ;;  %v1139_v32 = vpack.c.bf16 %v1122_v26, %v1118_v24  ;;  %v1053_v33 = vpop.f32.mrb[28].mxu0  ;;  %v1106_v34 = vpop.f32.mrb[28].mxu1 }
 0x3bc   : > { %v1054_v35 = vadd.f32 %v1053_v33, %v986_v27  ;;  %v1107_v36 = vadd.f32 %v1106_v34, %v986_v27  ;;  %v1055_v37 = vpop.f32.mrb[29].mxu0  ;;  %v1108_v38 = vpop.f32.mrb[29].mxu1 }
 0x3bd   : > { %v1056_v39 = vadd.f32 %v1055_v37, %v986_v27  ;;  %v1109_v40 = vadd.f32 %v1108_v38, %v986_v27  ;;  %v1057_v41 = vpop.f32.mrb[30].mxu0  ;;  %v1110_v42 = vpop.f32.mrb[30].mxu1  ;;  %1186 = vmatprep.subr.bf16.mxu0 %v1137_v31  ;;  %1239 = vmatprep.subr.bf16.mxu1 %v1139_v32 }
 0x3be   : > { %v1058_v43 = vadd.f32 %v1057_v41, %v991_v28  ;;  %v1111_v44 = vadd.f32 %v1110_v42, %v991_v28  ;;  %v1059_v45 = vpop.f32.mrb[31].mxu0  ;;  %v1112_v46 = vpop.f32.mrb[31].mxu1  ;;  %1187 = vmatpush1.bf16.msra.mxu0 %v1136_v29  ;;  %1240 = vmatpush1.bf16.msra.mxu1 %v1138_v30  ;;  %v1123_v49 = vmax.f32 %v1054_v35, 0.0  ;;  %v1125_v50 = vmax.f32 %v1107_v36, 0.0 }
 0x3bf   : > { %v1060_v47 = vadd.f32 %v1059_v45, %v991_v28  ;;  %v1113_v48 = vadd.f32 %v1112_v46, %v991_v28  ;;  %v1124_v53 = vmax.f32 %v1056_v39, 0.0  ;;  %v1126_v54 = vmax.f32 %v1109_v40, 0.0 }
 0x3c0   : > { %v1127_v51 = vmax.f32 %v1058_v43, 0.0  ;;  %v1129_v52 = vmax.f32 %v1111_v44, 0.0 }
 0x3c1   : > { %v1128_v55 = vmax.f32 %v1060_v47, 0.0  ;;  %v1130_v56 = vmax.f32 %v1113_v48, 0.0 }
 0x3c2   : > { %v1140_v57 = vpack.c.bf16 %v1127_v51, %v1123_v49  ;;  %v1142_v58 = vpack.c.bf16 %v1129_v52, %v1125_v50 }
 0x3c3   : > { %v1141_v59 = vpack.c.bf16 %v1128_v55, %v1124_v53  ;;  %v1143_v60 = vpack.c.bf16 %v1130_v56, %v1126_v54 }
 0x3c5   : > { %1188 = vmatprep.subr.bf16.mxu0 %v1141_v59  ;;  %1241 = vmatprep.subr.bf16.mxu1 %v1143_v60  ;;  %v2618_v60 = vld [vmem:[%s3177_s2 + $0x50] sm:$0xff]  }
 0x3c6   : > { %1189 = vmatpush1.bf16.msra.mxu0 %v1140_v57  ;;  %1242 = vmatpush1.bf16.msra.mxu1 %v1142_v58 }
 0x3c7   : > { %1190 = vmatprep.subr.bf16.mxu0 %v2838_v7  ;;  %1243 = vmatprep.subr.bf16.mxu1 %v2840_v8  ;;  %v2617_v7 = vld [vmem:[%s3177_s2 + $0x48] sm:$0xff]   ;;  %v1152_v8 = vpop.permute.xlu0 %1151 }
 0x3ca   : > { %1191 = vmatpush1.bf16.msra.mxu0 %v2843_v9  ;;  %1244 = vmatpush1.bf16.msra.mxu1 %v2845_v10  ;;  %v1157_v9 = vpop.permute.xlu1 %1156 }
 0x3cb   : > { %v1162_v26 = vpop.permute.xlu0 %1161 }
 0x3cd   : > { %2483 = vmatmul.mubr.msk.bf16.vlgmr.msra.gmra.mrb[32].mxu0 %vm1179_vm2, %v2616_v61  ;;  %2485 = vmatmul.mubr.msk.bf16.vlgmr.msra.gmra.mrb[32].mxu1 %vm1179_vm2, %v2616_v61  ;;  %v2619_v61 = vld [vmem:[%s3177_s2 + $0x58] sm:$0xff]  }
 0x3ce   : > { %1228 = vmatprep.mubr.bf16.mxu0 %v2712_v4  ;;  %1281 = vmatprep.mubr.bf16.mxu1 %v2712_v4  ;;  %v1167_v27 = vpop.permute.xlu1 %1166 }
 0x3d5   : > { %2484 = vmatmul.mubr.msk.bf16.gmra.mrb[36].mxu0 %vm1179_vm2, %v2617_v7  ;;  %2486 = vmatmul.mubr.msk.bf16.gmra.mrb[36].mxu1 %vm1179_vm2, %v2617_v7  ;;  %v1329_v7 = vpop.permute.xlu0 %1328 }
 0x3d6   : > { %1394 = vmatprep.mubr.bf16.mxu0 %v2712_v4  ;;  %1447 = vmatprep.mubr.bf16.mxu1 %v2712_v4 }
 0x4a0   : > { %v1220_v10 = vpop.f32.mrb[32].mxu0  ;;  %v1273_v62 = vpop.f32.mrb[32].mxu1 }
 0x4a1   : > { %v1221_v63 = vadd.f32 %v1220_v10, %v1152_v8  ;;  %v1274_v0 = vadd.f32 %v1273_v62, %v1152_v8  ;;  %v1222_v1 = vpop.f32.mrb[33].mxu0  ;;  %v1275_v2 = vpop.f32.mrb[33].mxu1 }
 0x4a2   : > { %v1223_v3 = vadd.f32 %v1222_v1, %v1152_v8  ;;  %v1276_v5 = vadd.f32 %v1275_v2, %v1152_v8  ;;  %v1224_v6 = vpop.f32.mrb[34].mxu0  ;;  %v1277_v11 = vpop.f32.mrb[34].mxu1 }
 0x4a3   : > { %v1225_v12 = vadd.f32 %v1224_v6, %v1157_v9  ;;  %v1278_v13 = vadd.f32 %v1277_v11, %v1157_v9  ;;  %v1226_v14 = vpop.f32.mrb[35].mxu0  ;;  %v1279_v15 = vpop.f32.mrb[35].mxu1  ;;  %v1292_v18 = vmax.f32 %v1221_v63, 0.0  ;;  %v1294_v19 = vmax.f32 %v1274_v0, 0.0 }
 0x4a4   : > { %v1227_v16 = vadd.f32 %v1226_v14, %v1157_v9  ;;  %v1280_v17 = vadd.f32 %v1279_v15, %v1157_v9  ;;  %v1293_v22 = vmax.f32 %v1223_v3, 0.0  ;;  %v1295_v23 = vmax.f32 %v1276_v5, 0.0  ;;  %v1334_v8 = vpop.permute.xlu1 %1333 }
 0x4a5   : > { %v1296_v20 = vmax.f32 %v1225_v12, 0.0  ;;  %v1298_v21 = vmax.f32 %v1278_v13, 0.0 }
 0x4a6   : > { %v1297_v24 = vmax.f32 %v1227_v16, 0.0  ;;  %v1299_v25 = vmax.f32 %v1280_v17, 0.0 }
 0x4a7   : > { %v1313_v28 = vpack.c.bf16 %v1296_v20, %v1292_v18  ;;  %v1315_v29 = vpack.c.bf16 %v1298_v21, %v1294_v19 }
 0x4a8   : > { %v1314_v30 = vpack.c.bf16 %v1297_v24, %v1293_v22  ;;  %v1316_v31 = vpack.c.bf16 %v1299_v25, %v1295_v23  ;;  %v1230_v32 = vpop.f32.mrb[36].mxu0  ;;  %v1283_v33 = vpop.f32.mrb[36].mxu1 }
 0x4a9   : > { %v1231_v34 = vadd.f32 %v1230_v32, %v1162_v26  ;;  %v1284_v35 = vadd.f32 %v1283_v33, %v1162_v26  ;;  %v1232_v36 = vpop.f32.mrb[37].mxu0  ;;  %v1285_v37 = vpop.f32.mrb[37].mxu1 }
 0x4aa   : > { %v1233_v38 = vadd.f32 %v1232_v36, %v1162_v26  ;;  %v1286_v39 = vadd.f32 %v1285_v37, %v1162_v26  ;;  %v1234_v40 = vpop.f32.mrb[38].mxu0  ;;  %v1287_v41 = vpop.f32.mrb[38].mxu1  ;;  %1362 = vmatprep.subr.bf16.mxu0 %v1314_v30  ;;  %1415 = vmatprep.subr.bf16.mxu1 %v1316_v31 }
 0x4ab   : > { %v1235_v42 = vadd.f32 %v1234_v40, %v1167_v27  ;;  %v1288_v43 = vadd.f32 %v1287_v41, %v1167_v27  ;;  %v1236_v44 = vpop.f32.mrb[39].mxu0  ;;  %v1289_v45 = vpop.f32.mrb[39].mxu1  ;;  %1363 = vmatpush1.bf16.msra.mxu0 %v1313_v28  ;;  %1416 = vmatpush1.bf16.msra.mxu1 %v1315_v29  ;;  %v1300_v48 = vmax.f32 %v1231_v34, 0.0  ;;  %v1302_v49 = vmax.f32 %v1284_v35, 0.0 }
 0x4ac   : > { %v1237_v46 = vadd.f32 %v1236_v44, %v1167_v27  ;;  %v1290_v47 = vadd.f32 %v1289_v45, %v1167_v27  ;;  %v1301_v52 = vmax.f32 %v1233_v38, 0.0  ;;  %v1303_v53 = vmax.f32 %v1286_v39, 0.0  ;;  %v1339_v25 = vpop.permute.xlu0 %1338  ;;  %v1344_v26 = vpop.permute.xlu1 %1343 }
 0x4ad   : > { %v1304_v50 = vmax.f32 %v1235_v42, 0.0  ;;  %v1306_v51 = vmax.f32 %v1288_v43, 0.0 }
 0x4ae   : > { %v1305_v54 = vmax.f32 %v1237_v46, 0.0  ;;  %v1307_v55 = vmax.f32 %v1290_v47, 0.0 }
 0x4af   : > { %v1317_v56 = vpack.c.bf16 %v1304_v50, %v1300_v48  ;;  %v1319_v57 = vpack.c.bf16 %v1306_v51, %v1302_v49 }
 0x4b0   : > { %v1318_v58 = vpack.c.bf16 %v1305_v54, %v1301_v52  ;;  %v1320_v59 = vpack.c.bf16 %v1307_v55, %v1303_v53 }
 0x4b2   : > { %1364 = vmatprep.subr.bf16.mxu0 %v1318_v58  ;;  %1417 = vmatprep.subr.bf16.mxu1 %v1320_v59  ;;  %v2620_v59 = vld [vmem:[%s3177_s2 + $0x60] sm:$0xff]  }
 0x4b3   : > { %1365 = vmatpush1.bf16.msra.mxu0 %v1317_v56  ;;  %1418 = vmatpush1.bf16.msra.mxu1 %v1319_v57 }
 0x4b6   : > { %2497 = vmatmul.mubr.msk.bf16.vlgmr.msra.gmra.mrb[40].mxu0 %vm650_vm1, %v2618_v60  ;;  %2499 = vmatmul.mubr.msk.bf16.vlgmr.msra.gmra.mrb[40].mxu1 %vm650_vm1, %v2618_v60  ;;  %v2621_v60 = vld [vmem:[%s3177_s2 + $0x68] sm:$0xff]  }
 0x4b7   : > { %1404 = vmatprep.mubr.bf16.mxu0 %v2712_v4  ;;  %1457 = vmatprep.mubr.bf16.mxu1 %v2712_v4 }
 0x4be   : > { %2498 = vmatmul.mubr.msk.bf16.gmra.mrb[44].mxu0 %vm650_vm1, %v2619_v61  ;;  %2500 = vmatmul.mubr.msk.bf16.gmra.mrb[44].mxu1 %vm650_vm1, %v2619_v61  ;;  %v1505_v61 = vpop.permute.xlu0 %1504 }
 0x4bf   : > { %1570 = vmatprep.mubr.bf16.mxu0 %v2712_v4  ;;  %1623 = vmatprep.mubr.bf16.mxu1 %v2712_v4 }
 0x589   : > { %v1396_v9 = vpop.f32.mrb[40].mxu0  ;;  %v1449_v10 = vpop.f32.mrb[40].mxu1 }
 0x58a   : > { %v1397_v62 = vadd.f32 %v1396_v9, %v1329_v7  ;;  %v1450_v63 = vadd.f32 %v1449_v10, %v1329_v7  ;;  %v1398_v0 = vpop.f32.mrb[41].mxu0  ;;  %v1451_v1 = vpop.f32.mrb[41].mxu1 }
 0x58b   : > { %v1399_v2 = vadd.f32 %v1398_v0, %v1329_v7  ;;  %v1452_v3 = vadd.f32 %v1451_v1, %v1329_v7  ;;  %v1400_v5 = vpop.f32.mrb[42].mxu0  ;;  %v1453_v6 = vpop.f32.mrb[42].mxu1 }
 0x58c   : > { %v1401_v11 = vadd.f32 %v1400_v5, %v1334_v8  ;;  %v1454_v12 = vadd.f32 %v1453_v6, %v1334_v8  ;;  %v1402_v13 = vpop.f32.mrb[43].mxu0  ;;  %v1455_v14 = vpop.f32.mrb[43].mxu1  ;;  %v1468_v17 = vmax.f32 %v1397_v62, 0.0  ;;  %v1470_v18 = vmax.f32 %v1450_v63, 0.0 }
 0x58d   : > { %v1403_v15 = vadd.f32 %v1402_v13, %v1334_v8  ;;  %v1456_v16 = vadd.f32 %v1455_v14, %v1334_v8  ;;  %v1469_v21 = vmax.f32 %v1399_v2, 0.0  ;;  %v1471_v22 = vmax.f32 %v1452_v3, 0.0  ;;  %v1510_v7 = vpop.permute.xlu1 %1509 }
 0x58e   : > { %v1472_v19 = vmax.f32 %v1401_v11, 0.0  ;;  %v1474_v20 = vmax.f32 %v1454_v12, 0.0 }
 0x58f   : > { %v1473_v23 = vmax.f32 %v1403_v15, 0.0  ;;  %v1475_v24 = vmax.f32 %v1456_v16, 0.0 }
 0x590   : > { %v1489_v27 = vpack.c.bf16 %v1472_v19, %v1468_v17  ;;  %v1491_v28 = vpack.c.bf16 %v1474_v20, %v1470_v18 }
 0x591   : > { %v1490_v29 = vpack.c.bf16 %v1473_v23, %v1469_v21  ;;  %v1492_v30 = vpack.c.bf16 %v1475_v24, %v1471_v22  ;;  %v1406_v31 = vpop.f32.mrb[44].mxu0  ;;  %v1459_v32 = vpop.f32.mrb[44].mxu1 }
 0x592   : > { %v1407_v33 = vadd.f32 %v1406_v31, %v1339_v25  ;;  %v1460_v34 = vadd.f32 %v1459_v32, %v1339_v25  ;;  %v1408_v35 = vpop.f32.mrb[45].mxu0  ;;  %v1461_v36 = vpop.f32.mrb[45].mxu1 }
 0x593   : > { %v1409_v37 = vadd.f32 %v1408_v35, %v1339_v25  ;;  %v1462_v38 = vadd.f32 %v1461_v36, %v1339_v25  ;;  %v1410_v39 = vpop.f32.mrb[46].mxu0  ;;  %v1463_v40 = vpop.f32.mrb[46].mxu1  ;;  %1538 = vmatprep.subr.bf16.mxu0 %v1490_v29  ;;  %1591 = vmatprep.subr.bf16.mxu1 %v1492_v30 }
 0x594   : > { %v1411_v41 = vadd.f32 %v1410_v39, %v1344_v26  ;;  %v1464_v42 = vadd.f32 %v1463_v40, %v1344_v26  ;;  %v1412_v43 = vpop.f32.mrb[47].mxu0  ;;  %v1465_v44 = vpop.f32.mrb[47].mxu1  ;;  %1539 = vmatpush1.bf16.msra.mxu0 %v1489_v27  ;;  %1592 = vmatpush1.bf16.msra.mxu1 %v1491_v28  ;;  %v1476_v47 = vmax.f32 %v1407_v33, 0.0  ;;  %v1478_v48 = vmax.f32 %v1460_v34, 0.0 }
 0x595   : > { %v1413_v45 = vadd.f32 %v1412_v43, %v1344_v26  ;;  %v1466_v46 = vadd.f32 %v1465_v44, %v1344_v26  ;;  %v1477_v51 = vmax.f32 %v1409_v37, 0.0  ;;  %v1479_v52 = vmax.f32 %v1462_v38, 0.0  ;;  %v1515_v24 = vpop.permute.xlu0 %1514  ;;  %v1520_v25 = vpop.permute.xlu1 %1519 }
 0x596   : > { %v1480_v49 = vmax.f32 %v1411_v41, 0.0  ;;  %v1482_v50 = vmax.f32 %v1464_v42, 0.0 }
 0x597   : > { %v1481_v53 = vmax.f32 %v1413_v45, 0.0  ;;  %v1483_v54 = vmax.f32 %v1466_v46, 0.0 }
 0x598   : > { %v1493_v55 = vpack.c.bf16 %v1480_v49, %v1476_v47  ;;  %v1495_v56 = vpack.c.bf16 %v1482_v50, %v1478_v48 }
 0x599   : > { %v1494_v57 = vpack.c.bf16 %v1481_v53, %v1477_v51  ;;  %v1496_v58 = vpack.c.bf16 %v1483_v54, %v1479_v52 }
 0x59b   : > { %1540 = vmatprep.subr.bf16.mxu0 %v1494_v57  ;;  %1593 = vmatprep.subr.bf16.mxu1 %v1496_v58  ;;  %v2622_v58 = vld [vmem:[%s3177_s2 + $0x70] sm:$0xff]  }
 0x59c   : > { %1541 = vmatpush1.bf16.msra.mxu0 %v1493_v55  ;;  %1594 = vmatpush1.bf16.msra.mxu1 %v1495_v56 }
 0x59f   : > { %2511 = vmatmul.mubr.msk.bf16.vlgmr.msra.gmra.mrb[48].mxu0 %vm650_vm1, %v2620_v59  ;;  %2513 = vmatmul.mubr.msk.bf16.vlgmr.msra.gmra.mrb[48].mxu1 %vm650_vm1, %v2620_v59  ;;  %v2623_v59 = vld [vmem:[%s3177_s2 + $0x78] sm:$0xff]  }
 0x5a0   : > { %1580 = vmatprep.mubr.bf16.mxu0 %v2712_v4  ;;  %1633 = vmatprep.mubr.bf16.mxu1 %v2712_v4 }
 0x5a7   : > { %2512 = vmatmul.mubr.msk.bf16.gmra.mrb[52].mxu0 %vm650_vm1, %v2621_v60  ;;  %2514 = vmatmul.mubr.msk.bf16.gmra.mrb[52].mxu1 %vm650_vm1, %v2621_v60  ;;  %v1681_v60 = vpop.permute.xlu0 %1680 }
 0x5a8   : > { %1746 = vmatprep.mubr.bf16.mxu0 %v2712_v4  ;;  %1799 = vmatprep.mubr.bf16.mxu1 %v2712_v4 }
 0x672   : > { %v1572_v8 = vpop.f32.mrb[48].mxu0  ;;  %v1625_v9 = vpop.f32.mrb[48].mxu1 }
 0x673   : > { %v1573_v10 = vadd.f32 %v1572_v8, %v1505_v61  ;;  %v1626_v62 = vadd.f32 %v1625_v9, %v1505_v61  ;;  %v1574_v63 = vpop.f32.mrb[49].mxu0  ;;  %v1627_v0 = vpop.f32.mrb[49].mxu1 }
 0x674   : > { %v1575_v1 = vadd.f32 %v1574_v63, %v1505_v61  ;;  %v1628_v2 = vadd.f32 %v1627_v0, %v1505_v61  ;;  %v1576_v3 = vpop.f32.mrb[50].mxu0  ;;  %v1629_v5 = vpop.f32.mrb[50].mxu1 }
 0x675   : > { %v1577_v6 = vadd.f32 %v1576_v3, %v1510_v7  ;;  %v1630_v11 = vadd.f32 %v1629_v5, %v1510_v7  ;;  %v1578_v12 = vpop.f32.mrb[51].mxu0  ;;  %v1631_v13 = vpop.f32.mrb[51].mxu1  ;;  %v1644_v16 = vmax.f32 %v1573_v10, 0.0  ;;  %v1646_v17 = vmax.f32 %v1626_v62, 0.0 }
 0x676   : > { %v1579_v14 = vadd.f32 %v1578_v12, %v1510_v7  ;;  %v1632_v15 = vadd.f32 %v1631_v13, %v1510_v7  ;;  %v1645_v20 = vmax.f32 %v1575_v1, 0.0  ;;  %v1647_v21 = vmax.f32 %v1628_v2, 0.0  ;;  %v1686_v61 = vpop.permute.xlu1 %1685 }
 0x677   : > { %v1648_v18 = vmax.f32 %v1577_v6, 0.0  ;;  %v1650_v19 = vmax.f32 %v1630_v11, 0.0 }
 0x678   : > { %v1649_v22 = vmax.f32 %v1579_v14, 0.0  ;;  %v1651_v23 = vmax.f32 %v1632_v15, 0.0 }
 0x679   : > { %v1665_v26 = vpack.c.bf16 %v1648_v18, %v1644_v16  ;;  %v1667_v27 = vpack.c.bf16 %v1650_v19, %v1646_v17 }
 0x67a   : > { %v1666_v28 = vpack.c.bf16 %v1649_v22, %v1645_v20  ;;  %v1668_v29 = vpack.c.bf16 %v1651_v23, %v1647_v21  ;;  %v1582_v30 = vpop.f32.mrb[52].mxu0  ;;  %v1635_v31 = vpop.f32.mrb[52].mxu1 }
 0x67b   : > { %v1583_v32 = vadd.f32 %v1582_v30, %v1515_v24  ;;  %v1636_v33 = vadd.f32 %v1635_v31, %v1515_v24  ;;  %v1584_v34 = vpop.f32.mrb[53].mxu0  ;;  %v1637_v35 = vpop.f32.mrb[53].mxu1 }
 0x67c   : > { %v1585_v36 = vadd.f32 %v1584_v34, %v1515_v24  ;;  %v1638_v37 = vadd.f32 %v1637_v35, %v1515_v24  ;;  %v1586_v38 = vpop.f32.mrb[54].mxu0  ;;  %v1639_v39 = vpop.f32.mrb[54].mxu1  ;;  %1714 = vmatprep.subr.bf16.mxu0 %v1666_v28  ;;  %1767 = vmatprep.subr.bf16.mxu1 %v1668_v29 }
 0x67d   : > { %v1587_v40 = vadd.f32 %v1586_v38, %v1520_v25  ;;  %v1640_v41 = vadd.f32 %v1639_v39, %v1520_v25  ;;  %v1588_v42 = vpop.f32.mrb[55].mxu0  ;;  %v1641_v43 = vpop.f32.mrb[55].mxu1  ;;  %1715 = vmatpush1.bf16.msra.mxu0 %v1665_v26  ;;  %1768 = vmatpush1.bf16.msra.mxu1 %v1667_v27  ;;  %v1652_v46 = vmax.f32 %v1583_v32, 0.0  ;;  %v1654_v47 = vmax.f32 %v1636_v33, 0.0 }
 0x67e   : > { %v1589_v44 = vadd.f32 %v1588_v42, %v1520_v25  ;;  %v1642_v45 = vadd.f32 %v1641_v43, %v1520_v25  ;;  %v1653_v50 = vmax.f32 %v1585_v36, 0.0  ;;  %v1655_v51 = vmax.f32 %v1638_v37, 0.0  ;;  %v1691_v23 = vpop.permute.xlu0 %1690  ;;  %v1696_v24 = vpop.permute.xlu1 %1695 }
 0x67f   : > { %v1656_v48 = vmax.f32 %v1587_v40, 0.0  ;;  %v1658_v49 = vmax.f32 %v1640_v41, 0.0 }
 0x680   : > { %v1657_v52 = vmax.f32 %v1589_v44, 0.0  ;;  %v1659_v53 = vmax.f32 %v1642_v45, 0.0 }
 0x681   : > { %v1669_v54 = vpack.c.bf16 %v1656_v48, %v1652_v46  ;;  %v1671_v55 = vpack.c.bf16 %v1658_v49, %v1654_v47 }
 0x682   : > { %v1670_v56 = vpack.c.bf16 %v1657_v52, %v1653_v50  ;;  %v1672_v57 = vpack.c.bf16 %v1659_v53, %v1655_v51 }
 0x684   : > { %1716 = vmatprep.subr.bf16.mxu0 %v1670_v56  ;;  %1769 = vmatprep.subr.bf16.mxu1 %v1672_v57  ;;  %v2624_v57 = vld [vmem:[%s3179_s4] sm:$0xff]  }
 0x685   : > { %1717 = vmatpush1.bf16.msra.mxu0 %v1669_v54  ;;  %1770 = vmatpush1.bf16.msra.mxu1 %v1671_v55 }
 0x688   : > { %2525 = vmatmul.mubr.msk.bf16.vlgmr.msra.gmra.mrb[56].mxu0 %vm650_vm1, %v2622_v58  ;;  %2527 = vmatmul.mubr.msk.bf16.vlgmr.msra.gmra.mrb[56].mxu1 %vm650_vm1, %v2622_v58  ;;  %v2625_v58 = vld [vmem:[%s3179_s4 + $0x8] sm:$0xff]  }
 0x689   : > { %1756 = vmatprep.mubr.bf16.mxu0 %v2712_v4  ;;  %1809 = vmatprep.mubr.bf16.mxu1 %v2712_v4 }
 0x690   : > { %2526 = vmatmul.mubr.msk.bf16.gmra.mrb[60].mxu0 %vm650_vm1, %v2623_v59  ;;  %2528 = vmatmul.mubr.msk.bf16.gmra.mrb[60].mxu1 %vm650_vm1, %v2623_v59  ;;  %v2626_v59 = vld [vmem:[%s3179_s4 + $0x10] ss:$0 sps:$4 sm:$0x11]  }
 0x691   : > { %1933 = vmatprep.mubr.bf16.mxu0 %v2712_v4  ;;  %1994 = vmatprep.mubr.bf16.mxu1 %v2712_v4 }
 0x75b   : > { %v1748_v7 = vpop.f32.mrb[56].mxu0  ;;  %v1801_v8 = vpop.f32.mrb[56].mxu1 }
 0x75c   : > { %v1749_v9 = vadd.f32 %v1748_v7, %v1681_v60  ;;  %v1802_v10 = vadd.f32 %v1801_v8, %v1681_v60  ;;  %v1750_v62 = vpop.f32.mrb[57].mxu0  ;;  %v1803_v63 = vpop.f32.mrb[57].mxu1 }
 0x75d   : > { %v1751_v0 = vadd.f32 %v1750_v62, %v1681_v60  ;;  %v1804_v1 = vadd.f32 %v1803_v63, %v1681_v60  ;;  %v1752_v2 = vpop.f32.mrb[58].mxu0  ;;  %v1805_v3 = vpop.f32.mrb[58].mxu1 }
 0x75e   : > { %v1753_v5 = vadd.f32 %v1752_v2, %v1686_v61  ;;  %v1806_v6 = vadd.f32 %v1805_v3, %v1686_v61  ;;  %v1754_v11 = vpop.f32.mrb[59].mxu0  ;;  %v1807_v12 = vpop.f32.mrb[59].mxu1  ;;  %v1820_v15 = vmax.f32 %v1749_v9, 0.0  ;;  %v1822_v16 = vmax.f32 %v1802_v10, 0.0 }
 0x75f   : > { %v1755_v13 = vadd.f32 %v1754_v11, %v1686_v61  ;;  %v1808_v14 = vadd.f32 %v1807_v12, %v1686_v61  ;;  %v1821_v19 = vmax.f32 %v1751_v0, 0.0  ;;  %v1823_v20 = vmax.f32 %v1804_v1, 0.0  ;;  %v1857_v60 = vpop.permute.xlu0 %1856  ;;  %v1862_v61 = vpop.permute.xlu1 %1861 }
 0x760   : > { %v1824_v17 = vmax.f32 %v1753_v5, 0.0  ;;  %v1826_v18 = vmax.f32 %v1806_v6, 0.0 }
 0x761   : > { %v1825_v21 = vmax.f32 %v1755_v13, 0.0  ;;  %v1827_v22 = vmax.f32 %v1808_v14, 0.0 }
 0x762   : > { %v1836_v25 = vpack.c.bf16 %v1824_v17, %v1820_v15  ;;  %v1838_v26 = vpack.c.bf16 %v1826_v18, %v1822_v16 }
 0x763   : > { %v1837_v27 = vpack.c.bf16 %v1825_v21, %v1821_v19  ;;  %v1839_v28 = vpack.c.bf16 %v1827_v22, %v1823_v20  ;;  %v1758_v29 = vpop.f32.mrb[60].mxu0  ;;  %v1811_v30 = vpop.f32.mrb[60].mxu1 }
 0x764   : > { %v1759_v31 = vadd.f32 %v1758_v29, %v1691_v23  ;;  %v1812_v32 = vadd.f32 %v1811_v30, %v1691_v23  ;;  %v1760_v33 = vpop.f32.mrb[61].mxu0  ;;  %v1813_v34 = vpop.f32.mrb[61].mxu1 }
 0x765   : > { %v1761_v35 = vadd.f32 %v1760_v33, %v1691_v23  ;;  %v1814_v36 = vadd.f32 %v1813_v34, %v1691_v23  ;;  %v1762_v37 = vpop.f32.mrb[62].mxu0  ;;  %v1815_v38 = vpop.f32.mrb[62].mxu1  ;;  %1901 = vmatprep.subr.bf16.mxu0 %v1837_v27  ;;  %1962 = vmatprep.subr.bf16.mxu1 %v1839_v28  ;;  %v413_v27 = vld [vmem:[%s405_s26] sm:$0xff]  ;;  %v414_v28 = vld [vmem:[%s405_s26 + $0x8] sm:$0xff] }
 0x766   : > { %v1763_v39 = vadd.f32 %v1762_v37, %v1696_v24  ;;  %v1816_v40 = vadd.f32 %v1815_v38, %v1696_v24  ;;  %v1764_v41 = vpop.f32.mrb[63].mxu0  ;;  %v1817_v42 = vpop.f32.mrb[63].mxu1  ;;  %1902 = vmatpush1.bf16.msra.mxu0 %v1836_v25  ;;  %1963 = vmatpush1.bf16.msra.mxu1 %v1838_v26  ;;  %v1828_v45 = vmax.f32 %v1759_v31, 0.0  ;;  %v1830_v46 = vmax.f32 %v1812_v32, 0.0 }
 0x767   : > { %v1765_v43 = vadd.f32 %v1764_v41, %v1696_v24  ;;  %v1818_v44 = vadd.f32 %v1817_v42, %v1696_v24  ;;  %v1829_v49 = vmax.f32 %v1761_v35, 0.0  ;;  %v1831_v50 = vmax.f32 %v1814_v36, 0.0  ;;  %v1867_v19 = vpop.permute.xlu0 %1866  ;;  %v1872_v20 = vpop.permute.xlu1 %1871 }
 0x768   : > { %v1832_v47 = vmax.f32 %v1763_v39, 0.0  ;;  %v1834_v48 = vmax.f32 %v1816_v40, 0.0  ;;  %v2539_v41 = vcombine.high %v413_v27, %v413_v27  ;;  %v2541_v42 = vcombine.high %v414_v28, %v414_v28 }
 0x769   : > { %v1833_v51 = vmax.f32 %v1765_v43, 0.0  ;;  %v1835_v52 = vmax.f32 %v1818_v44, 0.0 }
 0x76a   : > { %v1840_v53 = vpack.c.bf16 %v1832_v47, %v1828_v45  ;;  %v1842_v54 = vpack.c.bf16 %v1834_v48, %v1830_v46  ;;  %v2538_v45 = vcombine.low %v413_v27, %v413_v27  ;;  %v2540_v46 = vcombine.low %v414_v28, %v414_v28 }
 0x76b   : > { %v1841_v55 = vpack.c.bf16 %v1833_v51, %v1829_v49  ;;  %v1843_v56 = vpack.c.bf16 %v1835_v52, %v1831_v50 }
 0x76c   : > { %v2066_v51 = vsel %vm2064_vm3, %v2538_v45, 0  ;;  %v2072_v52 = vsel %vm2064_vm3, %v2540_v46, 0 }
 0x76d   : > { %1903 = vmatprep.subr.bf16.mxu0 %v1841_v55  ;;  %1964 = vmatprep.subr.bf16.mxu1 %v1843_v56 }
 0x76e   : > { %1904 = vmatpush1.bf16.msra.mxu0 %v1840_v53  ;;  %1965 = vmatpush1.bf16.msra.mxu1 %v1842_v54 }
 0x771   : > { %2532 = vmatmul.mubr.msk.bf16.vlgmr.msra.gmra.mrb[64].mxu0 %vm650_vm1, %v2624_v57  ;;  %2535 = vmatmul.mubr.msk.bf16.vlgmr.msra.gmra.mrb[64].mxu1 %vm650_vm1, %v2624_v57  ;;  %v2631_v57 = vld [vmem:[%s3181_s6] sm:$0xff]  }
 0x772   : > { %1943 = vmatprep.mubr.bf16.mxu0 %v2712_v4  ;;  %2004 = vmatprep.mubr.bf16.mxu1 %v2712_v4 }
 0x779   : > { %2533 = vmatmul.mubr.msk.bf16.gmra.mrb[68].mxu0 %vm650_vm1, %v2625_v58  ;;  %2536 = vmatmul.mubr.msk.bf16.gmra.mrb[68].mxu1 %vm650_vm1, %v2625_v58  ;;  %v2048_v58 = vpop.permute.xlu0 %2047 }
 0x77a   : > { %1953 = vmatprep.mubr.bf16.mxu0 %v2712_v4  ;;  %2014 = vmatprep.mubr.bf16.mxu1 %v2712_v4 }
 0x781   : > { %2534 = vmatmul.mubr.msk.bf16.gmra.mrb[72].mxu0 %vm650_vm1, %v2626_v59  ;;  %2537 = vmatmul.mubr.msk.bf16.gmra.mrb[72].mxu1 %vm650_vm1, %v2626_v59  ;;  %v2053_v59 = vpop.permute.xlu1 %2052 }
 0x782   : > { %2109 = vmatprep.mubr.bf16.mxu0 %v2712_v4  ;;  %2152 = vmatprep.mubr.bf16.mxu1 %v2712_v4 }
 0x844   : > { %v1935_v7 = vpop.f32.mrb[64].mxu0  ;;  %v1996_v8 = vpop.f32.mrb[64].mxu1 }
 0x845   : > { %v1937_v9 = vpop.f32.mrb[65].mxu0  ;;  %v1998_v10 = vpop.f32.mrb[65].mxu1  ;;  %v1936_v0 = vadd.f32 %v1935_v7, %v1857_v60  ;;  %v1997_v1 = vadd.f32 %v1996_v8, %v1857_v60 }
 0x846   : > { %v1939_v62 = vpop.f32.mrb[66].mxu0  ;;  %v2000_v63 = vpop.f32.mrb[66].mxu1  ;;  %v1938_v11 = vadd.f32 %v1937_v9, %v1857_v60  ;;  %v1999_v12 = vadd.f32 %v1998_v10, %v1857_v60 }
 0x847   : > { %v1940_v2 = vadd.f32 %v1939_v62, %v1862_v61  ;;  %v2001_v3 = vadd.f32 %v2000_v63, %v1862_v61  ;;  %v1941_v5 = vpop.f32.mrb[67].mxu0  ;;  %v2002_v6 = vpop.f32.mrb[67].mxu1 }
 0x848   : > { %v1942_v13 = vadd.f32 %v1941_v5, %v1862_v61  ;;  %v2003_v14 = vadd.f32 %v2002_v6, %v1862_v61 }
 0x849   : > { %v2023_v15 = vpack.c.bf16 %v1940_v2, %v1936_v0  ;;  %v2025_v16 = vpack.c.bf16 %v2001_v3, %v1997_v1 }
 0x84a   : > { %v2024_v17 = vpack.c.bf16 %v1942_v13, %v1938_v11  ;;  %v2026_v18 = vpack.c.bf16 %v2003_v14, %v1999_v12 }
 0x84c   : > { %v1945_v21 = vpop.f32.mrb[68].mxu0  ;;  %v2006_v22 = vpop.f32.mrb[68].mxu1  ;;  %2077 = vmatprep.subr.bf16.mxu0 %v2024_v17  ;;  %2120 = vmatprep.subr.bf16.mxu1 %v2026_v18 }
 0x84d   : > { %v1947_v23 = vpop.f32.mrb[69].mxu0  ;;  %v2008_v24 = vpop.f32.mrb[69].mxu1  ;;  %2078 = vmatpush1.bf16.msra.mxu0 %v2023_v15  ;;  %2121 = vmatpush1.bf16.msra.mxu1 %v2025_v16  ;;  %v1946_v29 = vadd.f32 %v1945_v21, %v1867_v19  ;;  %v2007_v30 = vadd.f32 %v2006_v22, %v1867_v19 }
 0x84e   : > { %v1949_v25 = vpop.f32.mrb[70].mxu0  ;;  %v2010_v26 = vpop.f32.mrb[70].mxu1  ;;  %v1948_v35 = vadd.f32 %v1947_v23, %v1867_v19  ;;  %v2009_v36 = vadd.f32 %v2008_v24, %v1867_v19  ;;  %v2171_v24 = vld [vmem:[%s3183_s8] sm:$0x3] }
 0x84f   : > { %v1950_v31 = vadd.f32 %v1949_v25, %v1872_v20  ;;  %v2011_v32 = vadd.f32 %v2010_v26, %v1872_v20  ;;  %v1951_v33 = vpop.f32.mrb[71].mxu0  ;;  %v2012_v34 = vpop.f32.mrb[71].mxu1 }
 0x850   : > { %v1952_v37 = vadd.f32 %v1951_v33, %v1872_v20  ;;  %v2013_v38 = vadd.f32 %v2012_v34, %v1872_v20  ;;  %v2180_v25 = vpop.permute.xlu0 %2179 }
 0x851   : > { %v2027_v39 = vpack.c.bf16 %v1950_v31, %v1946_v29  ;;  %v2029_v40 = vpack.c.bf16 %v2011_v32, %v2007_v30 }
 0x852   : > { %v2028_v43 = vpack.c.bf16 %v1952_v37, %v1948_v35  ;;  %v2030_v44 = vpack.c.bf16 %v2013_v38, %v2009_v36 }
 0x854   : > { %v3101_v47 = vpop.f32.mrb[72].mxu0  ;;  %v3103_v48 = vpop.f32.mrb[72].mxu1  ;;  %2079 = vmatprep.subr.bf16.mxu0 %v2028_v43  ;;  %2122 = vmatprep.subr.bf16.mxu1 %v2030_v44 }
 0x855   : > { %v3105_v49 = vpop.f32.mrb[73].mxu0  ;;  %v3107_v50 = vpop.f32.mrb[73].mxu1  ;;  %2080 = vmatpush1.bf16.msra.mxu0 %v2027_v39  ;;  %2123 = vmatpush1.bf16.msra.mxu1 %v2029_v40 }
 0x856   : > { %2543 = vmatprep.subr.msk.bf16.mxu0 %vm2064_vm3, %v2539_v41  ;;  %2545 = vmatprep.subr.msk.bf16.mxu1 %vm2064_vm3, %v2541_v42  ;;  %v1959_v53 = vpop.f32.mrb[74].mxu0  ;;  %v2020_v54 = vpop.f32.mrb[74].mxu1 }
 0x857   : > { %v1960_v55 = vpop.f32.mrb[75].mxu0  ;;  %v2021_v56 = vpop.f32.mrb[75].mxu1 }
 0x858   : > { %v1877_v55 = vpop.permute.xlu1 %1876 }
 0x859   : > { %2082 = vmatpush1.bf16.msra.mxu0 %v2066_v51  ;;  %2125 = vmatpush1.bf16.msra.mxu1 %v2072_v52 }
 0x85c   : > { %2544 = vmatmul.mubr.msk.bf16.vlgmr.msra.gmra.mrb[76].mxu0 %vm2060_vm4, %v2631_v57  ;;  %2546 = vmatmul.mubr.msk.bf16.vlgmr.msra.gmra.mrb[76].mxu1 %vm2060_vm4, %v2631_v57  ;;  %v1956_v57 = vadd.f32 %v3101_v47, %v1877_v55 }
 0x85d   : > { %2217 = vmatprep.mubr.bf16.mxu0 %v2712_v4  ;;  %2258 = vmatprep.mubr.bf16.mxu1 %v2712_v4 }
 0x92f   : > { %v2111_v60 = vpop.f32.mrb[76].mxu0  ;;  %v2154_v61 = vpop.f32.mrb[76].mxu1 }
 0x930   : > { %v2112_v7 = vadd.f32 %v2111_v60, %v2048_v58  ;;  %v2155_v8 = vadd.f32 %v2154_v61, %v2048_v58  ;;  %v2113_v9 = vpop.f32.mrb[77].mxu0  ;;  %v2156_v10 = vpop.f32.mrb[77].mxu1  ;;  %v2017_v60 = vadd.f32 %v3103_v48, %v1877_v55 }
 0x931   : > { %v2114_v62 = vadd.f32 %v2113_v9, %v2048_v58  ;;  %v2157_v63 = vadd.f32 %v2156_v10, %v2048_v58  ;;  %v2115_v0 = vpop.f32.mrb[78].mxu0  ;;  %v2158_v1 = vpop.f32.mrb[78].mxu1 }
 0x932   : > { %v2116_v2 = vadd.f32 %v2115_v0, %v2053_v59  ;;  %v2159_v3 = vadd.f32 %v2158_v1, %v2053_v59  ;;  %v2117_v5 = vpop.f32.mrb[79].mxu0  ;;  %v2160_v6 = vpop.f32.mrb[79].mxu1  ;;  %v2163_v13 = vmax.f32 %v2112_v7, 0.0  ;;  %v2165_v4 = vmax.f32 %v2155_v8, 0.0 }
 0x933   : > { %v2118_v11 = vadd.f32 %v2117_v5, %v2053_v59  ;;  %v2161_v12 = vadd.f32 %v2160_v6, %v2053_v59  ;;  %v2164_v16 = vmax.f32 %v2114_v62, 0.0  ;;  %v2166_v17 = vmax.f32 %v2157_v63, 0.0 }
 0x934   : > { %v2167_v14 = vmax.f32 %v2116_v2, 0.0  ;;  %v2169_v15 = vmax.f32 %v2159_v3, 0.0  ;;  %v1958_v8 = vadd.f32 %v3105_v49, %v1877_v55  ;;  %v2019_v62 = vadd.f32 %v3107_v50, %v1877_v55 }
 0x935   : > { %v2168_v18 = vmax.f32 %v2118_v11, 0.0  ;;  %v2170_v19 = vmax.f32 %v2161_v12, 0.0 }
 0x936   : > { %v2172_v20 = vpack.c.bf16 %v2167_v14, %v2163_v13  ;;  %v2174_v21 = vpack.c.bf16 %v2169_v15, %v2165_v4 }
 0x937   : > { %v2173_v22 = vpack.c.bf16 %v2168_v18, %v2164_v16  ;;  %v2175_v23 = vpack.c.bf16 %v2170_v19, %v2166_v17 }
 0x939   : > { %2185 = vmatprep.subr.bf16.mxu0 %v2173_v22  ;;  %2226 = vmatprep.subr.bf16.mxu1 %v2175_v23 }
 0x93a   : > { %2186 = vmatpush1.bf16.msra.mxu0 %v2172_v20  ;;  %2227 = vmatpush1.bf16.msra.mxu1 %v2174_v21 }
 0x93d   : > { %2547 = vmatmul.mubr.msk.bf16.vlgmr.msra.gmra.mrb[80].mxu0 %vm473_vm0, %v2171_v24  ;;  %2548 = vmatmul.mubr.msk.bf16.vlgmr.msra.gmra.mrb[80].mxu1 %vm473_vm0, %v2171_v24 }
 0xa10   : > { %v2219_v26 = vpop.f32.mrb[80].mxu0  ;;  %v2260_v27 = vpop.f32.mrb[80].mxu1 }
 0xa11   : > { %v2220_v28 = vadd.f32 %v2219_v26, %v2180_v25  ;;  %v2261_v29 = vadd.f32 %v2260_v27, %v2180_v25  ;;  %v2221_v30 = vpop.f32.mrb[81].mxu0  ;;  %v2262_v31 = vpop.f32.mrb[81].mxu1 }
 0xa12   : > { %v2222_v32 = vadd.f32 %v2221_v30, %v2180_v25  ;;  %v2263_v33 = vadd.f32 %v2262_v31, %v2180_v25  ;;  %v2223_v34 = vpop.f32.mrb[82].mxu0  ;;  %v2264_v35 = vpop.f32.mrb[82].mxu1 }
 0xa13   : > { %v2549_v36 = vmul.f32 -1.442695, %v2220_v28  ;;  %v2551_v37 = vmul.f32 -1.442695, %v2261_v29  ;;  %v2224_v38 = vpop.f32.mrb[83].mxu0  ;;  %v2265_v39 = vpop.f32.mrb[83].mxu1 }
 0xa14   : > { %v2550_v40 = vmul.f32 -1.442695, %v2222_v32  ;;  %v2552_v41 = vmul.f32 -1.442695, %v2263_v33 }
 0xa15   : > { %2632 = vpow2.f32 %v2549_v36 }
 0xa16   : > { %2634 = vpow2.f32 %v2551_v37 }
 0xa17   : > { %2636 = vpow2.f32 %v2550_v40 }
 0xa18   : > { %2638 = vpow2.f32 %v2552_v41 }
 0xa1f   : > { %v2633_v42 = vpop.eup %2632 }
 0xa20   : > { %v2635_v43 = vpop.eup %2634  ;;  %v2279_v44 = vadd.f32 1.0, %v2633_v42 }
 0xa21   : > { %v2637_v45 = vpop.eup %2636  ;;  %v2281_v46 = vadd.f32 1.0, %v2635_v43 }
 0xa22   : > { %v2639_v51 = vpop.eup %2638  ;;  %2640 = vrcp.f32 %v2279_v44  ;;  %v2280_v52 = vadd.f32 1.0, %v2637_v45 }
 0xa23   : > { %2642 = vrcp.f32 %v2281_v46  ;;  %v2282_v53 = vadd.f32 1.0, %v2639_v51 }
 0xa24   : > { %2644 = vrcp.f32 %v2280_v52 }
 0xa25   : > { %2646 = vrcp.f32 %v2282_v53 }
 0xa2c   : > { %v2641_v54 = vpop.eup %2640 }
 0xa2d   : > { %v2643_v56 = vpop.eup %2642  ;;  %v2295_v58 = vrot.slane %v2641_v54, 7 }
 0xa2e   : > { %v2645_v59 = vpop.eup %2644  ;;  %v2297_v61 = vrot.slane %v2643_v56, 7 }
 0xa2f   : > { %v2647_v7 = vpop.eup %2646  ;;  %v2296_v9 = vrot.slane %v2645_v59, 7  ;;  %v2304_v10 = vsel %vm2303_vm5, %v1956_v57, %v2295_v58 }
 0xa30   : > { %v2298_v63 = vrot.slane %v2647_v7, 7  ;;  %v2306_v0 = vsel %vm2303_vm5, %v2017_v60, %v2297_v61 }
 0xa31   : > { %v2305_v47 = vsel %vm2303_vm5, %v1958_v8, %v2296_v9 }
 0xa32   : > { %v2307_v48 = vsel %vm2303_vm5, %v2019_v62, %v2298_v63  ;;  %v2312_v1 = vcombine.low %v2304_v10, %v2305_v47 }
 0xa33   : > { %v2313_v2 = vcombine.low %v2306_v0, %v2307_v48 }
 0xa34   : > { %2316 = vst [vmem:[%s399_s20] sm:$0xff] %v2312_v1 }
 0xa35   : > { %2317 = vst [vmem:[%s399_s20 + $0x8] sm:$0xff] %v2313_v2 }
 0xa36   : > { %2661 = shalt.err (!%p2658_p7)
}
 0xa37   : > { %s2662_s12 = scalar_lea.hbm %s3132_s27, 256  ;;  %s2666_s25 = scalar_lea.hbm %s3185_s10, 1024 }
 0xa38   : > { %p2663_p9 = scmp.ne.s32.totalorder %s3132_s27, %s2662_s12  ;;  %p2667_p12 = scmp.lt.u32.totalorder %s3132_s27, %s3185_s10 }
 0xa39   : > { %p2668_p13 = scmp.lt.u32.totalorder %s2666_s25, %s2662_s12  ;;  %p2670_p1 = scmp.lt.u32.totalorder %s2662_s12, %s3132_s27 }
 0xa3a   : > { %p2664_p10 = pnand %p2663_p9, %p2808_p6 }
 0xa3b   : > { %p2669_p0 = por %p2668_p13, %p2667_p12 }
 0xa3c   : > { %p2665_p11 = pneg %p2664_p10 }
 0xa3d   : > { %p2671_p2 = por %p2670_p1, %p2669_p0 }
 0xa3f   : > { %p2672_p3 = pnand %p2671_p2, %p2665_p11 }
 0xa41   : > { %2675 = shalt.err (!%p2672_p3)
}
 0xa42   : > { %2560 = dma.vmem_to_hbm [thread:$0]  (%p2808_p6), %s3134_s21, 256, %s3132_s27, %s2319_s17  }
 0xa43 PF: > { %p2566_p4 = scmp.ge.s32.totalorder %s2710_s16, 2  ;;  %s2345_s28 = sand.u32 1, %s2698_s13  }
 0xa44   : > { %s2346_s30 = scalar_lea.sflag [#allocation4], %s2345_s28 }
 0xa45   : > { %p2563_p5 = pnand %p2566_p4, %p2812_p8 }
 0xa47   : > { %2693 = dma.done.wait (!%p2563_p5), %s2346_s30, 256  }
 0xa48   : > { %2695 = vsyncadd (!%p2563_p5), %s2346_s30, 4294967040  ;;  %p20_p7 = scmp.ge.s32.totalorder %s2794_s19, 6   ;;  %s3188_s13 = smov %s2702_s14 }
 0xa49   : > { %s3189_s14 = smov %s2706_s15  ;;  %s3190_s15 = smov %s2806_s22 }
 0xa4a   : > { %s3191_s16 = smov %s2794_s19  ;;  %22 = sbr.rel (!%p20_p7) target bundleno = 3 (0x3), region = 140 }
 0xa51   :  { %2351 = vsyncpa [#allocation4], 1 }
 0xa52   :  { %2353 = vsyncpa [#allocation4 + $0x1], 1 }

</bundles_post_ra>
